<compile_context>
chip_gen: v7x
topology: tpu7x:2x2x1
jax: 0.10.0
libtpu: 0.0.40
codegen_flags: <defaults>
</compile_context>

<pallas_src>
import functools

import jax
import jax.numpy as jnp
from jax.experimental import pallas as pl
from jax.experimental.pallas import tpu as pltpu


# ------------------------------ fused kernel -------------------------------- #

def _shift_slices(comps, W, length):
    """comps[a][b]: (C, H*W) flat, row stride W.
    Returns dict[(a, b, sh, sw)] -> (C, length) lane slice at offset sh*W + sw."""
    out = {}
    for a in range(2):
        for b in range(2):
            for sh in range(2):
                for sw in range(2):
                    off = sh * W + sw
                    out[(a, b, sh, sw)] = comps[a][b][:, off:off + length]
    return out


def _decoder_kernel(x_ref, skp_ref, wup_ref, w1u_ref, w1s_ref, w2_ref,
                    b1_ref, b2_ref, out_ref, *, H, W, Cout):
    """Per-batch fused decoder layer.

    x_ref   : (Cin, H*W)        input activations, channel-major, pixels on lanes
    skp_ref : (4, Cskip, H*W)   cropped skip, parity-split (a*2+b, c, i*W+j)
    wup_ref : (4*Cout, Cin)     ConvTranspose2d weights, row = (a*2+b)*Cout + co
    w1u_ref : (9, Cout, Cout)   conv1 taps acting on the up channels
    w1s_ref : (9, Cout, Cskip)  conv1 taps acting on the skip channels
    w2_ref  : (9, Cout, Cout)   conv2 taps
    b1_ref  : (Cout, 1), b2_ref: (Cout, 1)
    out_ref : (4, Cout, L2)     conv2 output, parity-split, flat row stride W
    """
    HW = H * W
    L1 = (H - 1) * W - 1        # flat length of conv1 parity components
    L2 = (H - 2) * W - 2        # flat length of conv2 parity components

    # --- ConvTranspose2d(k=2, s=2): all 4 sub-pixel images in one MXU matmul ---
    x = x_ref[...]                                                   # (Cin, HW)
    up_all = jnp.dot(wup_ref[...], x,
                     preferred_element_type=jnp.float32)             # (4*Cout, HW)
    u = [[up_all[(a * 2 + b) * Cout:(a * 2 + b + 1) * Cout, :]
          for b in range(2)] for a in range(2)]                      # (Cout, HW)
    sk = [[skp_ref[a * 2 + b] for b in range(2)] for a in range(2)]  # (Cskip, HW)

    b1 = b1_ref[...]                                                 # (Cout, 1)
    b2 = b2_ref[...]
    w1u = [w1u_ref[t] for t in range(9)]
    w1s = [w1s_ref[t] for t in range(9)]
    w2t = [w2_ref[t] for t in range(9)]

    # --- Conv2d(3x3) #1 + ReLU, in parity space, split-K over up/skip groups ---
    u_sl = _shift_slices(u, W, L1)
    s_sl = _shift_slices(sk, W, L1)
    c1 = [[None, None], [None, None]]
    for pa in range(2):
        for qa in range(2):
            acc = jnp.zeros((Cout, L1), jnp.float32) + b1
            for dh in range(3):
                a, sh = (pa + dh) & 1, (pa + dh) >> 1
                for dw in range(3):
                    bb, sw = (qa + dw) & 1, (qa + dw) >> 1
                    t = dh * 3 + dw
                    acc = acc + jnp.dot(w1u[t], u_sl[(a, bb, sh, sw)],
                                        preferred_element_type=jnp.float32)
                    acc = acc + jnp.dot(w1s[t], s_sl[(a, bb, sh, sw)],
                                        preferred_element_type=jnp.float32)
            c1[pa][qa] = jnp.maximum(acc, 0.0)

    # --- Conv2d(3x3) #2 + ReLU, still in parity space ---
    c1_sl = _shift_slices(c1, W, L2)
    for ra in range(2):
        for ca in range(2):
            acc = jnp.zeros((Cout, L2), jnp.float32) + b2
            for dh in range(3):
                a, sh = (ra + dh) & 1, (ra + dh) >> 1
                for dw in range(3):
                    bb, sw = (ca + dw) & 1, (ca + dw) >> 1
                    acc = acc + jnp.dot(w2t[dh * 3 + dw],
                                        c1_sl[(a, bb, sh, sw)],
                                        preferred_element_type=jnp.float32)
            out_ref[ra * 2 + ca] = jnp.maximum(acc, 0.0)


def _decoder_pallas(x_flat, skip_par, wup_mat, w1u, w1s, w2t, b1c, b2c, *, H, W):
    N, Cin, HW = x_flat.shape
    Cskip = skip_par.shape[2]
    Cout = b1c.shape[0]
    L2 = (H - 2) * W - 2
    kernel = functools.partial(_decoder_kernel, H=H, W=W, Cout=Cout)
    return pl.pallas_call(
        kernel,
        out_shape=jax.ShapeDtypeStruct((N, 4, Cout, L2), jnp.float32),
        grid=(N,),
        in_specs=[
            pl.BlockSpec((None, Cin, HW), lambda n: (n, 0, 0)),
            pl.BlockSpec((None, 4, Cskip, HW), lambda n: (n, 0, 0, 0)),
            pl.BlockSpec((4 * Cout, Cin), lambda n: (0, 0)),
            pl.BlockSpec((9, Cout, Cout), lambda n: (0, 0, 0)),
            pl.BlockSpec((9, Cout, Cskip), lambda n: (0, 0, 0)),
            pl.BlockSpec((9, Cout, Cout), lambda n: (0, 0, 0)),
            pl.BlockSpec((Cout, 1), lambda n: (0, 0)),
            pl.BlockSpec((Cout, 1), lambda n: (0, 0)),
        ],
        out_specs=pl.BlockSpec((None, 4, Cout, L2), lambda n: (n, 0, 0, 0)),
        compiler_params=pltpu.CompilerParams(
            dimension_semantics=("parallel",)),
    )(x_flat, skip_par, wup_mat, w1u, w1s, w2t, b1c, b2c)


# ------------------------------ forward wrapper ------------------------------ #

def decoder_forward(params, input_layer, cropping_layer):
    """DecoderLayer.forward. Inputs/outputs NCHW (PyTorch convention)."""
    w_up, w1, b1, w2, b2 = params
    x = input_layer.astype(jnp.float32)
    skip = cropping_layer.astype(jnp.float32)

    N, Cin, H, W = x.shape
    Cout = w_up.shape[1]
    Cskip = skip.shape[1]
    Hu, Wu = 2 * H, 2 * W

    # crop the skip (same formula as the PyTorch module: (prev-cur)//2 * -1)
    p = (skip.shape[2] - Hu) // 2 * -1
    skip = jax.lax.pad(skip, jnp.float32(0.0),
                       ((0, 0, 0), (0, 0, 0), (p, p, 0), (p, p, 0)))
    # parity-split (space-to-depth) so the kernel never builds the interleaved
    # upsampled tensor nor the channel concat:  (N, 4, Cskip, H*W)
    skip_par = (skip.reshape(N, Cskip, H, 2, W, 2)
                    .transpose(0, 3, 5, 1, 2, 4)
                    .reshape(N, 4, Cskip, H * W))

    x_flat = x.reshape(N, Cin, H * W)

    # weight preprocessing (tiny, done once per call)
    wup_mat = jnp.transpose(w_up, (2, 3, 1, 0)).reshape(4 * Cout, Cin).astype(jnp.float32)
    w1u = jnp.transpose(w1[:, :Cout], (2, 3, 0, 1)).reshape(9, Cout, Cout).astype(jnp.float32)
    w1s = jnp.transpose(w1[:, Cout:], (2, 3, 0, 1)).reshape(9, Cout, Cskip).astype(jnp.float32)
    w2t = jnp.transpose(w2, (2, 3, 0, 1)).reshape(9, Cout, Cout).astype(jnp.float32)
    b1c = b1.reshape(Cout, 1).astype(jnp.float32)
    b2c = b2.reshape(Cout, 1).astype(jnp.float32)

    out_par = _decoder_pallas(x_flat, skip_par, wup_mat, w1u, w1s, w2t, b1c, b2c,
                              H=H, W=W)                     # (N, 4, Cout, L2)

    # depth-to-space: reassemble the 4 output parities into NCHW (one XLA op on
    # the final, already-small output).
    Ho, Wo = Hu - 4, Wu - 4
    Hc, Wc = H - 2, W - 2
    out_pad = jnp.pad(out_par, ((0, 0), (0, 0), (0, 0),
                                (0, Hc * W - out_par.shape[-1])))
    out6 = out_pad.reshape(N, 2, 2, Cout, Hc, W)[..., :Wc]  # (n, ra, ca, d, pi, qj)
    out = out6.transpose(0, 3, 4, 1, 5, 2).reshape(N, Cout, Ho, Wo)
    return out


# ----------------------------- pure-JAX reference ---------------------------- #

def reference_forward(params, input_layer, cropping_layer):
    w_up, w1, b1, w2, b2 = params
    N, Cin, H, W = input_layer.shape
    Cout = w_up.shape[1]
    up = jnp.einsum('nchw,cdij->ndhiwj', input_layer, w_up).reshape(
        N, Cout, 2 * H, 2 * W)
    p = (cropping_layer.shape[2] - up.shape[2]) // 2 * -1
    skip = jax.lax.pad(cropping_layer, jnp.float32(0.0),
                       ((0, 0, 0), (0, 0, 0), (p, p, 0), (p, p, 0)))
    comb = jnp.concatenate([up, skip], axis=1)

    def conv(x, w, b):
        y = jax.lax.conv_general_dilated(
            x, w, (1, 1), 'VALID', dimension_numbers=('NCHW', 'OIHW', 'NCHW'))
        return jax.nn.relu(y + b[None, :, None, None])

    return conv(conv(comb, w1, b1), w2, b2)


# ------------------------------------ main ----------------------------------- #

if __name__ == "__main__":
    IN_C, OUT_C = 4, 2                  # DecoderLayer(in_channels=4, out_channels=2)
    N, H, W = 2, 8, 8                   # input 8x8 -> upsampled 16x16
    SKIP_HW = 18                        # skip gets center-cropped 18x18 -> 16x16

    key = jax.random.PRNGKey(0)
    k = jax.random.split(key, 7)

    w_up = 0.1 * jax.random.normal(k[0], (IN_C, OUT_C, 2, 2), jnp.float32)  # ConvTranspose2d
    w1 = 0.1 * jax.random.normal(k[1], (OUT_C, IN_C, 3, 3), jnp.float32)    # Conv2d #1
    b1 = 0.1 * jax.random.normal(k[2], (OUT_C,), jnp.float32)
    w2 = 0.1 * jax.random.normal(k[3], (OUT_C, OUT_C, 3, 3), jnp.float32)   # Conv2d #2
    b2 = 0.1 * jax.random.normal(k[4], (OUT_C,), jnp.float32)
    params = (w_up, w1, b1, w2, b2)

    input_layer = jax.random.normal(k[5], (N, IN_C, H, W), jnp.float32)
    cropping_layer = jax.random.normal(
        k[6], (N, IN_C - OUT_C, SKIP_HW, SKIP_HW), jnp.float32)

    fwd = jax.jit(decoder_forward)
    out = jax.block_until_ready(fwd(params, input_layer, cropping_layer))

    ref = jax.block_until_ready(
        reference_forward(params, input_layer, cropping_layer))

    assert out.shape == (N, OUT_C, 2 * H - 4, 2 * W - 4), out.shape
    assert jnp.allclose(out, ref, atol=1e-3, rtol=1e-3), \
        float(jnp.max(jnp.abs(out - ref)))

    print("KERNEL_OK")
</pallas_src>

<mosaic_0001>
module attributes {stable_mosaic.version = 11 : i64} {
  func.func @_decoder_kernel(%arg0: i32, %arg1: memref<1x4x64xf32, #tpu.memory_space<vmem>>, %arg2: memref<1x4x2x64xf32, #tpu.memory_space<vmem>>, %arg3: memref<8x4xf32, #tpu.memory_space<vmem>>, %arg4: memref<9x2x2xf32, #tpu.memory_space<vmem>>, %arg5: memref<9x2x2xf32, #tpu.memory_space<vmem>>, %arg6: memref<9x2x2xf32, #tpu.memory_space<vmem>>, %arg7: memref<2x1xf32, #tpu.memory_space<vmem>>, %arg8: memref<2x1xf32, #tpu.memory_space<vmem>>, %arg9: memref<1x4x2x46xf32, #tpu.memory_space<vmem>>) attributes {dimension_semantics = [#tpu.dimension_semantics<parallel>], iteration_bounds = array<i64: 2>, scalar_prefetch = 0 : i64, scratch_operands = 0 : i64, tpu.core_type = #tpu.core_type<tc>, window_params = [{transform_indices = @transform_0, window_bounds = array<i64: 1, 4, 64>}, {transform_indices = @transform_1, window_bounds = array<i64: 1, 4, 2, 64>}, {pipeline_mode = #tpu.pipeline_mode<synchronous>, transform_indices = @transform_2, window_bounds = array<i64: 8, 4>}, {pipeline_mode = #tpu.pipeline_mode<synchronous>, transform_indices = @transform_3, window_bounds = array<i64: 9, 2, 2>}, {pipeline_mode = #tpu.pipeline_mode<synchronous>, transform_indices = @transform_4, window_bounds = array<i64: 9, 2, 2>}, {pipeline_mode = #tpu.pipeline_mode<synchronous>, transform_indices = @transform_5, window_bounds = array<i64: 9, 2, 2>}, {pipeline_mode = #tpu.pipeline_mode<synchronous>, transform_indices = @transform_6, window_bounds = array<i64: 2, 1>}, {pipeline_mode = #tpu.pipeline_mode<synchronous>, transform_indices = @transform_7, window_bounds = array<i64: 2, 1>}, {transform_indices = @transform_8, window_bounds = array<i64: 1, 4, 2, 46>}]} {
    %c0 = arith.constant 0 : index
    %c0_0 = arith.constant 0 : index
    %c0_1 = arith.constant 0 : index
    %0 = vector.load %arg1[%c0, %c0_0, %c0_1] : memref<1x4x64xf32, #tpu.memory_space<vmem>>, vector<1x4x64xf32>
    %1 = vector.shape_cast %0 : vector<1x4x64xf32> to vector<4x64xf32>
    %c0_2 = arith.constant 0 : index
    %c0_3 = arith.constant 0 : index
    %2 = vector.load %arg3[%c0_2, %c0_3] : memref<8x4xf32, #tpu.memory_space<vmem>>, vector<8x4xf32>
    %cst = arith.constant dense<0.000000e+00> : vector<8x64xf32>
    %3 = tpu.matmul %2, %1, %cst {dimension_numbers = #tpu.dot_dimension_numbers<[1], [0], [0], [1], [0, 0, 1, 1], [], []>} : vector<8x4xf32>, vector<4x64xf32>, vector<8x64xf32> -> vector<8x64xf32>
    %4 = vector.extract_strided_slice %3 {offsets = [0, 0], sizes = [2, 64], strides = [1, 1]} : vector<8x64xf32> to vector<2x64xf32>
    %5 = vector.extract_strided_slice %3 {offsets = [2, 0], sizes = [2, 64], strides = [1, 1]} : vector<8x64xf32> to vector<2x64xf32>
    %6 = vector.extract_strided_slice %3 {offsets = [4, 0], sizes = [2, 64], strides = [1, 1]} : vector<8x64xf32> to vector<2x64xf32>
    %7 = vector.extract_strided_slice %3 {offsets = [6, 0], sizes = [2, 64], strides = [1, 1]} : vector<8x64xf32> to vector<2x64xf32>
    %c0_4 = arith.constant 0 : index
    %c0_5 = arith.constant 0 : index
    %c0_6 = arith.constant 0 : index
    %c0_7 = arith.constant 0 : index
    %8 = vector.load %arg2[%c0_4, %c0_5, %c0_6, %c0_7] : memref<1x4x2x64xf32, #tpu.memory_space<vmem>>, vector<1x1x2x64xf32>
    %9 = vector.shape_cast %8 : vector<1x1x2x64xf32> to vector<2x64xf32>
    %c0_8 = arith.constant 0 : index
    %c1 = arith.constant 1 : index
    %c0_9 = arith.constant 0 : index
    %c0_10 = arith.constant 0 : index
    %10 = vector.load %arg2[%c0_8, %c1, %c0_9, %c0_10] : memref<1x4x2x64xf32, #tpu.memory_space<vmem>>, vector<1x1x2x64xf32>
    %11 = vector.shape_cast %10 : vector<1x1x2x64xf32> to vector<2x64xf32>
    %c0_11 = arith.constant 0 : index
    %c2 = arith.constant 2 : index
    %c0_12 = arith.constant 0 : index
    %c0_13 = arith.constant 0 : index
    %12 = vector.load %arg2[%c0_11, %c2, %c0_12, %c0_13] : memref<1x4x2x64xf32, #tpu.memory_space<vmem>>, vector<1x1x2x64xf32>
    %13 = vector.shape_cast %12 : vector<1x1x2x64xf32> to vector<2x64xf32>
    %c0_14 = arith.constant 0 : index
    %c3 = arith.constant 3 : index
    %c0_15 = arith.constant 0 : index
    %c0_16 = arith.constant 0 : index
    %14 = vector.load %arg2[%c0_14, %c3, %c0_15, %c0_16] : memref<1x4x2x64xf32, #tpu.memory_space<vmem>>, vector<1x1x2x64xf32>
    %15 = vector.shape_cast %14 : vector<1x1x2x64xf32> to vector<2x64xf32>
    %c0_17 = arith.constant 0 : index
    %c0_18 = arith.constant 0 : index
    %16 = vector.load %arg7[%c0_17, %c0_18] : memref<2x1xf32, #tpu.memory_space<vmem>>, vector<2x1xf32>
    %c0_19 = arith.constant 0 : index
    %c0_20 = arith.constant 0 : index
    %17 = vector.load %arg8[%c0_19, %c0_20] : memref<2x1xf32, #tpu.memory_space<vmem>>, vector<2x1xf32>
    %c0_21 = arith.constant 0 : index
    %c0_22 = arith.constant 0 : index
    %c0_23 = arith.constant 0 : index
    %18 = vector.load %arg4[%c0_21, %c0_22, %c0_23] : memref<9x2x2xf32, #tpu.memory_space<vmem>>, vector<1x2x2xf32>
    %19 = vector.shape_cast %18 : vector<1x2x2xf32> to vector<2x2xf32>
    %c1_24 = arith.constant 1 : index
    %c0_25 = arith.constant 0 : index
    %c0_26 = arith.constant 0 : index
    %20 = vector.load %arg4[%c1_24, %c0_25, %c0_26] : memref<9x2x2xf32, #tpu.memory_space<vmem>>, vector<1x2x2xf32>
    %21 = vector.shape_cast %20 : vector<1x2x2xf32> to vector<2x2xf32>
    %c2_27 = arith.constant 2 : index
    %c0_28 = arith.constant 0 : index
    %c0_29 = arith.constant 0 : index
    %22 = vector.load %arg4[%c2_27, %c0_28, %c0_29] : memref<9x2x2xf32, #tpu.memory_space<vmem>>, vector<1x2x2xf32>
    %23 = vector.shape_cast %22 : vector<1x2x2xf32> to vector<2x2xf32>
    %c3_30 = arith.constant 3 : index
    %c0_31 = arith.constant 0 : index
    %c0_32 = arith.constant 0 : index
    %24 = vector.load %arg4[%c3_30, %c0_31, %c0_32] : memref<9x2x2xf32, #tpu.memory_space<vmem>>, vector<1x2x2xf32>
    %25 = vector.shape_cast %24 : vector<1x2x2xf32> to vector<2x2xf32>
    %c4 = arith.constant 4 : index
    %c0_33 = arith.constant 0 : index
    %c0_34 = arith.constant 0 : index
    %26 = vector.load %arg4[%c4, %c0_33, %c0_34] : memref<9x2x2xf32, #tpu.memory_space<vmem>>, vector<1x2x2xf32>
    %27 = vector.shape_cast %26 : vector<1x2x2xf32> to vector<2x2xf32>
    %c5 = arith.constant 5 : index
    %c0_35 = arith.constant 0 : index
    %c0_36 = arith.constant 0 : index
    %28 = vector.load %arg4[%c5, %c0_35, %c0_36] : memref<9x2x2xf32, #tpu.memory_space<vmem>>, vector<1x2x2xf32>
    %29 = vector.shape_cast %28 : vector<1x2x2xf32> to vector<2x2xf32>
    %c6 = arith.constant 6 : index
    %c0_37 = arith.constant 0 : index
    %c0_38 = arith.constant 0 : index
    %30 = vector.load %arg4[%c6, %c0_37, %c0_38] : memref<9x2x2xf32, #tpu.memory_space<vmem>>, vector<1x2x2xf32>
    %31 = vector.shape_cast %30 : vector<1x2x2xf32> to vector<2x2xf32>
    %c7 = arith.constant 7 : index
    %c0_39 = arith.constant 0 : index
    %c0_40 = arith.constant 0 : index
    %32 = vector.load %arg4[%c7, %c0_39, %c0_40] : memref<9x2x2xf32, #tpu.memory_space<vmem>>, vector<1x2x2xf32>
    %33 = vector.shape_cast %32 : vector<1x2x2xf32> to vector<2x2xf32>
    %c8 = arith.constant 8 : index
    %c0_41 = arith.constant 0 : index
    %c0_42 = arith.constant 0 : index
    %34 = vector.load %arg4[%c8, %c0_41, %c0_42] : memref<9x2x2xf32, #tpu.memory_space<vmem>>, vector<1x2x2xf32>
    %35 = vector.shape_cast %34 : vector<1x2x2xf32> to vector<2x2xf32>
    %c0_43 = arith.constant 0 : index
    %c0_44 = arith.constant 0 : index
    %c0_45 = arith.constant 0 : index
    %36 = vector.load %arg5[%c0_43, %c0_44, %c0_45] : memref<9x2x2xf32, #tpu.memory_space<vmem>>, vector<1x2x2xf32>
    %37 = vector.shape_cast %36 : vector<1x2x2xf32> to vector<2x2xf32>
    %c1_46 = arith.constant 1 : index
    %c0_47 = arith.constant 0 : index
    %c0_48 = arith.constant 0 : index
    %38 = vector.load %arg5[%c1_46, %c0_47, %c0_48] : memref<9x2x2xf32, #tpu.memory_space<vmem>>, vector<1x2x2xf32>
    %39 = vector.shape_cast %38 : vector<1x2x2xf32> to vector<2x2xf32>
    %c2_49 = arith.constant 2 : index
    %c0_50 = arith.constant 0 : index
    %c0_51 = arith.constant 0 : index
    %40 = vector.load %arg5[%c2_49, %c0_50, %c0_51] : memref<9x2x2xf32, #tpu.memory_space<vmem>>, vector<1x2x2xf32>
    %41 = vector.shape_cast %40 : vector<1x2x2xf32> to vector<2x2xf32>
    %c3_52 = arith.constant 3 : index
    %c0_53 = arith.constant 0 : index
    %c0_54 = arith.constant 0 : index
    %42 = vector.load %arg5[%c3_52, %c0_53, %c0_54] : memref<9x2x2xf32, #tpu.memory_space<vmem>>, vector<1x2x2xf32>
    %43 = vector.shape_cast %42 : vector<1x2x2xf32> to vector<2x2xf32>
    %c4_55 = arith.constant 4 : index
    %c0_56 = arith.constant 0 : index
    %c0_57 = arith.constant 0 : index
    %44 = vector.load %arg5[%c4_55, %c0_56, %c0_57] : memref<9x2x2xf32, #tpu.memory_space<vmem>>, vector<1x2x2xf32>
    %45 = vector.shape_cast %44 : vector<1x2x2xf32> to vector<2x2xf32>
    %c5_58 = arith.constant 5 : index
    %c0_59 = arith.constant 0 : index
    %c0_60 = arith.constant 0 : index
    %46 = vector.load %arg5[%c5_58, %c0_59, %c0_60] : memref<9x2x2xf32, #tpu.memory_space<vmem>>, vector<1x2x2xf32>
    %47 = vector.shape_cast %46 : vector<1x2x2xf32> to vector<2x2xf32>
    %c6_61 = arith.constant 6 : index
    %c0_62 = arith.constant 0 : index
    %c0_63 = arith.constant 0 : index
    %48 = vector.load %arg5[%c6_61, %c0_62, %c0_63] : memref<9x2x2xf32, #tpu.memory_space<vmem>>, vector<1x2x2xf32>
    %49 = vector.shape_cast %48 : vector<1x2x2xf32> to vector<2x2xf32>
    %c7_64 = arith.constant 7 : index
    %c0_65 = arith.constant 0 : index
    %c0_66 = arith.constant 0 : index
    %50 = vector.load %arg5[%c7_64, %c0_65, %c0_66] : memref<9x2x2xf32, #tpu.memory_space<vmem>>, vector<1x2x2xf32>
    %51 = vector.shape_cast %50 : vector<1x2x2xf32> to vector<2x2xf32>
    %c8_67 = arith.constant 8 : index
    %c0_68 = arith.constant 0 : index
    %c0_69 = arith.constant 0 : index
    %52 = vector.load %arg5[%c8_67, %c0_68, %c0_69] : memref<9x2x2xf32, #tpu.memory_space<vmem>>, vector<1x2x2xf32>
    %53 = vector.shape_cast %52 : vector<1x2x2xf32> to vector<2x2xf32>
    %c0_70 = arith.constant 0 : index
    %c0_71 = arith.constant 0 : index
    %c0_72 = arith.constant 0 : index
    %54 = vector.load %arg6[%c0_70, %c0_71, %c0_72] : memref<9x2x2xf32, #tpu.memory_space<vmem>>, vector<1x2x2xf32>
    %55 = vector.shape_cast %54 : vector<1x2x2xf32> to vector<2x2xf32>
    %c1_73 = arith.constant 1 : index
    %c0_74 = arith.constant 0 : index
    %c0_75 = arith.constant 0 : index
    %56 = vector.load %arg6[%c1_73, %c0_74, %c0_75] : memref<9x2x2xf32, #tpu.memory_space<vmem>>, vector<1x2x2xf32>
    %57 = vector.shape_cast %56 : vector<1x2x2xf32> to vector<2x2xf32>
    %c2_76 = arith.constant 2 : index
    %c0_77 = arith.constant 0 : index
    %c0_78 = arith.constant 0 : index
    %58 = vector.load %arg6[%c2_76, %c0_77, %c0_78] : memref<9x2x2xf32, #tpu.memory_space<vmem>>, vector<1x2x2xf32>
    %59 = vector.shape_cast %58 : vector<1x2x2xf32> to vector<2x2xf32>
    %c3_79 = arith.constant 3 : index
    %c0_80 = arith.constant 0 : index
    %c0_81 = arith.constant 0 : index
    %60 = vector.load %arg6[%c3_79, %c0_80, %c0_81] : memref<9x2x2xf32, #tpu.memory_space<vmem>>, vector<1x2x2xf32>
    %61 = vector.shape_cast %60 : vector<1x2x2xf32> to vector<2x2xf32>
    %c4_82 = arith.constant 4 : index
    %c0_83 = arith.constant 0 : index
    %c0_84 = arith.constant 0 : index
    %62 = vector.load %arg6[%c4_82, %c0_83, %c0_84] : memref<9x2x2xf32, #tpu.memory_space<vmem>>, vector<1x2x2xf32>
    %63 = vector.shape_cast %62 : vector<1x2x2xf32> to vector<2x2xf32>
    %c5_85 = arith.constant 5 : index
    %c0_86 = arith.constant 0 : index
    %c0_87 = arith.constant 0 : index
    %64 = vector.load %arg6[%c5_85, %c0_86, %c0_87] : memref<9x2x2xf32, #tpu.memory_space<vmem>>, vector<1x2x2xf32>
    %65 = vector.shape_cast %64 : vector<1x2x2xf32> to vector<2x2xf32>
    %c6_88 = arith.constant 6 : index
    %c0_89 = arith.constant 0 : index
    %c0_90 = arith.constant 0 : index
    %66 = vector.load %arg6[%c6_88, %c0_89, %c0_90] : memref<9x2x2xf32, #tpu.memory_space<vmem>>, vector<1x2x2xf32>
    %67 = vector.shape_cast %66 : vector<1x2x2xf32> to vector<2x2xf32>
    %c7_91 = arith.constant 7 : index
    %c0_92 = arith.constant 0 : index
    %c0_93 = arith.constant 0 : index
    %68 = vector.load %arg6[%c7_91, %c0_92, %c0_93] : memref<9x2x2xf32, #tpu.memory_space<vmem>>, vector<1x2x2xf32>
    %69 = vector.shape_cast %68 : vector<1x2x2xf32> to vector<2x2xf32>
    %c8_94 = arith.constant 8 : index
    %c0_95 = arith.constant 0 : index
    %c0_96 = arith.constant 0 : index
    %70 = vector.load %arg6[%c8_94, %c0_95, %c0_96] : memref<9x2x2xf32, #tpu.memory_space<vmem>>, vector<1x2x2xf32>
    %71 = vector.shape_cast %70 : vector<1x2x2xf32> to vector<2x2xf32>
    %72 = vector.extract_strided_slice %4 {offsets = [0, 0], sizes = [2, 55], strides = [1, 1]} : vector<2x64xf32> to vector<2x55xf32>
    %73 = vector.extract_strided_slice %4 {offsets = [0, 1], sizes = [2, 55], strides = [1, 1]} : vector<2x64xf32> to vector<2x55xf32>
    %74 = vector.extract_strided_slice %4 {offsets = [0, 8], sizes = [2, 55], strides = [1, 1]} : vector<2x64xf32> to vector<2x55xf32>
    %75 = vector.extract_strided_slice %4 {offsets = [0, 9], sizes = [2, 55], strides = [1, 1]} : vector<2x64xf32> to vector<2x55xf32>
    %76 = vector.extract_strided_slice %5 {offsets = [0, 0], sizes = [2, 55], strides = [1, 1]} : vector<2x64xf32> to vector<2x55xf32>
    %77 = vector.extract_strided_slice %5 {offsets = [0, 1], sizes = [2, 55], strides = [1, 1]} : vector<2x64xf32> to vector<2x55xf32>
    %78 = vector.extract_strided_slice %5 {offsets = [0, 8], sizes = [2, 55], strides = [1, 1]} : vector<2x64xf32> to vector<2x55xf32>
    %79 = vector.extract_strided_slice %5 {offsets = [0, 9], sizes = [2, 55], strides = [1, 1]} : vector<2x64xf32> to vector<2x55xf32>
    %80 = vector.extract_strided_slice %6 {offsets = [0, 0], sizes = [2, 55], strides = [1, 1]} : vector<2x64xf32> to vector<2x55xf32>
    %81 = vector.extract_strided_slice %6 {offsets = [0, 1], sizes = [2, 55], strides = [1, 1]} : vector<2x64xf32> to vector<2x55xf32>
    %82 = vector.extract_strided_slice %6 {offsets = [0, 8], sizes = [2, 55], strides = [1, 1]} : vector<2x64xf32> to vector<2x55xf32>
    %83 = vector.extract_strided_slice %6 {offsets = [0, 9], sizes = [2, 55], strides = [1, 1]} : vector<2x64xf32> to vector<2x55xf32>
    %84 = vector.extract_strided_slice %7 {offsets = [0, 0], sizes = [2, 55], strides = [1, 1]} : vector<2x64xf32> to vector<2x55xf32>
    %85 = vector.extract_strided_slice %7 {offsets = [0, 1], sizes = [2, 55], strides = [1, 1]} : vector<2x64xf32> to vector<2x55xf32>
    %86 = vector.extract_strided_slice %7 {offsets = [0, 8], sizes = [2, 55], strides = [1, 1]} : vector<2x64xf32> to vector<2x55xf32>
    %87 = vector.extract_strided_slice %7 {offsets = [0, 9], sizes = [2, 55], strides = [1, 1]} : vector<2x64xf32> to vector<2x55xf32>
    %88 = vector.extract_strided_slice %9 {offsets = [0, 0], sizes = [2, 55], strides = [1, 1]} : vector<2x64xf32> to vector<2x55xf32>
    %89 = vector.extract_strided_slice %9 {offsets = [0, 1], sizes = [2, 55], strides = [1, 1]} : vector<2x64xf32> to vector<2x55xf32>
    %90 = vector.extract_strided_slice %9 {offsets = [0, 8], sizes = [2, 55], strides = [1, 1]} : vector<2x64xf32> to vector<2x55xf32>
    %91 = vector.extract_strided_slice %9 {offsets = [0, 9], sizes = [2, 55], strides = [1, 1]} : vector<2x64xf32> to vector<2x55xf32>
    %92 = vector.extract_strided_slice %11 {offsets = [0, 0], sizes = [2, 55], strides = [1, 1]} : vector<2x64xf32> to vector<2x55xf32>
    %93 = vector.extract_strided_slice %11 {offsets = [0, 1], sizes = [2, 55], strides = [1, 1]} : vector<2x64xf32> to vector<2x55xf32>
    %94 = vector.extract_strided_slice %11 {offsets = [0, 8], sizes = [2, 55], strides = [1, 1]} : vector<2x64xf32> to vector<2x55xf32>
    %95 = vector.extract_strided_slice %11 {offsets = [0, 9], sizes = [2, 55], strides = [1, 1]} : vector<2x64xf32> to vector<2x55xf32>
    %96 = vector.extract_strided_slice %13 {offsets = [0, 0], sizes = [2, 55], strides = [1, 1]} : vector<2x64xf32> to vector<2x55xf32>
    %97 = vector.extract_strided_slice %13 {offsets = [0, 1], sizes = [2, 55], strides = [1, 1]} : vector<2x64xf32> to vector<2x55xf32>
    %98 = vector.extract_strided_slice %13 {offsets = [0, 8], sizes = [2, 55], strides = [1, 1]} : vector<2x64xf32> to vector<2x55xf32>
    %99 = vector.extract_strided_slice %13 {offsets = [0, 9], sizes = [2, 55], strides = [1, 1]} : vector<2x64xf32> to vector<2x55xf32>
    %100 = vector.extract_strided_slice %15 {offsets = [0, 0], sizes = [2, 55], strides = [1, 1]} : vector<2x64xf32> to vector<2x55xf32>
    %101 = vector.extract_strided_slice %15 {offsets = [0, 1], sizes = [2, 55], strides = [1, 1]} : vector<2x64xf32> to vector<2x55xf32>
    %102 = vector.extract_strided_slice %15 {offsets = [0, 8], sizes = [2, 55], strides = [1, 1]} : vector<2x64xf32> to vector<2x55xf32>
    %103 = vector.extract_strided_slice %15 {offsets = [0, 9], sizes = [2, 55], strides = [1, 1]} : vector<2x64xf32> to vector<2x55xf32>
    %cst_97 = arith.constant 0.000000e+00 : f32
    %104 = vector.broadcast %cst_97 : f32 to vector<2x55xf32>
    %105 = vector.broadcast %16 : vector<2x1xf32> to vector<2x55xf32>
    %106 = arith.addf %104, %105 : vector<2x55xf32>
    %cst_98 = arith.constant dense<0.000000e+00> : vector<2x55xf32>
    %107 = tpu.matmul %19, %72, %cst_98 {dimension_numbers = #tpu.dot_dimension_numbers<[1], [0], [0], [1], [0, 0, 1, 1], [], []>} : vector<2x2xf32>, vector<2x55xf32>, vector<2x55xf32> -> vector<2x55xf32>
    %108 = arith.addf %106, %107 : vector<2x55xf32>
    %cst_99 = arith.constant dense<0.000000e+00> : vector<2x55xf32>
    %109 = tpu.matmul %37, %88, %cst_99 {dimension_numbers = #tpu.dot_dimension_numbers<[1], [0], [0], [1], [0, 0, 1, 1], [], []>} : vector<2x2xf32>, vector<2x55xf32>, vector<2x55xf32> -> vector<2x55xf32>
    %110 = arith.addf %108, %109 : vector<2x55xf32>
    %cst_100 = arith.constant dense<0.000000e+00> : vector<2x55xf32>
    %111 = tpu.matmul %21, %76, %cst_100 {dimension_numbers = #tpu.dot_dimension_numbers<[1], [0], [0], [1], [0, 0, 1, 1], [], []>} : vector<2x2xf32>, vector<2x55xf32>, vector<2x55xf32> -> vector<2x55xf32>
    %112 = arith.addf %110, %111 : vector<2x55xf32>
    %cst_101 = arith.constant dense<0.000000e+00> : vector<2x55xf32>
    %113 = tpu.matmul %39, %92, %cst_101 {dimension_numbers = #tpu.dot_dimension_numbers<[1], [0], [0], [1], [0, 0, 1, 1], [], []>} : vector<2x2xf32>, vector<2x55xf32>, vector<2x55xf32> -> vector<2x55xf32>
    %114 = arith.addf %112, %113 : vector<2x55xf32>
    %cst_102 = arith.constant dense<0.000000e+00> : vector<2x55xf32>
    %115 = tpu.matmul %23, %73, %cst_102 {dimension_numbers = #tpu.dot_dimension_numbers<[1], [0], [0], [1], [0, 0, 1, 1], [], []>} : vector<2x2xf32>, vector<2x55xf32>, vector<2x55xf32> -> vector<2x55xf32>
    %116 = arith.addf %114, %115 : vector<2x55xf32>
    %cst_103 = arith.constant dense<0.000000e+00> : vector<2x55xf32>
    %117 = tpu.matmul %41, %89, %cst_103 {dimension_numbers = #tpu.dot_dimension_numbers<[1], [0], [0], [1], [0, 0, 1, 1], [], []>} : vector<2x2xf32>, vector<2x55xf32>, vector<2x55xf32> -> vector<2x55xf32>
    %118 = arith.addf %116, %117 : vector<2x55xf32>
    %cst_104 = arith.constant dense<0.000000e+00> : vector<2x55xf32>
    %119 = tpu.matmul %25, %80, %cst_104 {dimension_numbers = #tpu.dot_dimension_numbers<[1], [0], [0], [1], [0, 0, 1, 1], [], []>} : vector<2x2xf32>, vector<2x55xf32>, vector<2x55xf32> -> vector<2x55xf32>
    %120 = arith.addf %118, %119 : vector<2x55xf32>
    %cst_105 = arith.constant dense<0.000000e+00> : vector<2x55xf32>
    %121 = tpu.matmul %43, %96, %cst_105 {dimension_numbers = #tpu.dot_dimension_numbers<[1], [0], [0], [1], [0, 0, 1, 1], [], []>} : vector<2x2xf32>, vector<2x55xf32>, vector<2x55xf32> -> vector<2x55xf32>
    %122 = arith.addf %120, %121 : vector<2x55xf32>
    %cst_106 = arith.constant dense<0.000000e+00> : vector<2x55xf32>
    %123 = tpu.matmul %27, %84, %cst_106 {dimension_numbers = #tpu.dot_dimension_numbers<[1], [0], [0], [1], [0, 0, 1, 1], [], []>} : vector<2x2xf32>, vector<2x55xf32>, vector<2x55xf32> -> vector<2x55xf32>
    %124 = arith.addf %122, %123 : vector<2x55xf32>
    %cst_107 = arith.constant dense<0.000000e+00> : vector<2x55xf32>
    %125 = tpu.matmul %45, %100, %cst_107 {dimension_numbers = #tpu.dot_dimension_numbers<[1], [0], [0], [1], [0, 0, 1, 1], [], []>} : vector<2x2xf32>, vector<2x55xf32>, vector<2x55xf32> -> vector<2x55xf32>
    %126 = arith.addf %124, %125 : vector<2x55xf32>
    %cst_108 = arith.constant dense<0.000000e+00> : vector<2x55xf32>
    %127 = tpu.matmul %29, %81, %cst_108 {dimension_numbers = #tpu.dot_dimension_numbers<[1], [0], [0], [1], [0, 0, 1, 1], [], []>} : vector<2x2xf32>, vector<2x55xf32>, vector<2x55xf32> -> vector<2x55xf32>
    %128 = arith.addf %126, %127 : vector<2x55xf32>
    %cst_109 = arith.constant dense<0.000000e+00> : vector<2x55xf32>
    %129 = tpu.matmul %47, %97, %cst_109 {dimension_numbers = #tpu.dot_dimension_numbers<[1], [0], [0], [1], [0, 0, 1, 1], [], []>} : vector<2x2xf32>, vector<2x55xf32>, vector<2x55xf32> -> vector<2x55xf32>
    %130 = arith.addf %128, %129 : vector<2x55xf32>
    %cst_110 = arith.constant dense<0.000000e+00> : vector<2x55xf32>
    %131 = tpu.matmul %31, %74, %cst_110 {dimension_numbers = #tpu.dot_dimension_numbers<[1], [0], [0], [1], [0, 0, 1, 1], [], []>} : vector<2x2xf32>, vector<2x55xf32>, vector<2x55xf32> -> vector<2x55xf32>
    %132 = arith.addf %130, %131 : vector<2x55xf32>
    %cst_111 = arith.constant dense<0.000000e+00> : vector<2x55xf32>
    %133 = tpu.matmul %49, %90, %cst_111 {dimension_numbers = #tpu.dot_dimension_numbers<[1], [0], [0], [1], [0, 0, 1, 1], [], []>} : vector<2x2xf32>, vector<2x55xf32>, vector<2x55xf32> -> vector<2x55xf32>
    %134 = arith.addf %132, %133 : vector<2x55xf32>
    %cst_112 = arith.constant dense<0.000000e+00> : vector<2x55xf32>
    %135 = tpu.matmul %33, %78, %cst_112 {dimension_numbers = #tpu.dot_dimension_numbers<[1], [0], [0], [1], [0, 0, 1, 1], [], []>} : vector<2x2xf32>, vector<2x55xf32>, vector<2x55xf32> -> vector<2x55xf32>
    %136 = arith.addf %134, %135 : vector<2x55xf32>
    %cst_113 = arith.constant dense<0.000000e+00> : vector<2x55xf32>
    %137 = tpu.matmul %51, %94, %cst_113 {dimension_numbers = #tpu.dot_dimension_numbers<[1], [0], [0], [1], [0, 0, 1, 1], [], []>} : vector<2x2xf32>, vector<2x55xf32>, vector<2x55xf32> -> vector<2x55xf32>
    %138 = arith.addf %136, %137 : vector<2x55xf32>
    %cst_114 = arith.constant dense<0.000000e+00> : vector<2x55xf32>
    %139 = tpu.matmul %35, %75, %cst_114 {dimension_numbers = #tpu.dot_dimension_numbers<[1], [0], [0], [1], [0, 0, 1, 1], [], []>} : vector<2x2xf32>, vector<2x55xf32>, vector<2x55xf32> -> vector<2x55xf32>
    %140 = arith.addf %138, %139 : vector<2x55xf32>
    %cst_115 = arith.constant dense<0.000000e+00> : vector<2x55xf32>
    %141 = tpu.matmul %53, %91, %cst_115 {dimension_numbers = #tpu.dot_dimension_numbers<[1], [0], [0], [1], [0, 0, 1, 1], [], []>} : vector<2x2xf32>, vector<2x55xf32>, vector<2x55xf32> -> vector<2x55xf32>
    %142 = arith.addf %140, %141 : vector<2x55xf32>
    %cst_116 = arith.constant 0.000000e+00 : f32
    %143 = vector.broadcast %cst_116 : f32 to vector<2x55xf32>
    %144 = arith.maximumf %142, %143 : vector<2x55xf32>
    %cst_117 = arith.constant 0.000000e+00 : f32
    %145 = vector.broadcast %cst_117 : f32 to vector<2x55xf32>
    %146 = vector.broadcast %16 : vector<2x1xf32> to vector<2x55xf32>
    %147 = arith.addf %145, %146 : vector<2x55xf32>
    %cst_118 = arith.constant dense<0.000000e+00> : vector<2x55xf32>
    %148 = tpu.matmul %19, %76, %cst_118 {dimension_numbers = #tpu.dot_dimension_numbers<[1], [0], [0], [1], [0, 0, 1, 1], [], []>} : vector<2x2xf32>, vector<2x55xf32>, vector<2x55xf32> -> vector<2x55xf32>
    %149 = arith.addf %147, %148 : vector<2x55xf32>
    %cst_119 = arith.constant dense<0.000000e+00> : vector<2x55xf32>
    %150 = tpu.matmul %37, %92, %cst_119 {dimension_numbers = #tpu.dot_dimension_numbers<[1], [0], [0], [1], [0, 0, 1, 1], [], []>} : vector<2x2xf32>, vector<2x55xf32>, vector<2x55xf32> -> vector<2x55xf32>
    %151 = arith.addf %149, %150 : vector<2x55xf32>
    %cst_120 = arith.constant dense<0.000000e+00> : vector<2x55xf32>
    %152 = tpu.matmul %21, %73, %cst_120 {dimension_numbers = #tpu.dot_dimension_numbers<[1], [0], [0], [1], [0, 0, 1, 1], [], []>} : vector<2x2xf32>, vector<2x55xf32>, vector<2x55xf32> -> vector<2x55xf32>
    %153 = arith.addf %151, %152 : vector<2x55xf32>
    %cst_121 = arith.constant dense<0.000000e+00> : vector<2x55xf32>
    %154 = tpu.matmul %39, %89, %cst_121 {dimension_numbers = #tpu.dot_dimension_numbers<[1], [0], [0], [1], [0, 0, 1, 1], [], []>} : vector<2x2xf32>, vector<2x55xf32>, vector<2x55xf32> -> vector<2x55xf32>
    %155 = arith.addf %153, %154 : vector<2x55xf32>
    %cst_122 = arith.constant dense<0.000000e+00> : vector<2x55xf32>
    %156 = tpu.matmul %23, %77, %cst_122 {dimension_numbers = #tpu.dot_dimension_numbers<[1], [0], [0], [1], [0, 0, 1, 1], [], []>} : vector<2x2xf32>, vector<2x55xf32>, vector<2x55xf32> -> vector<2x55xf32>
    %157 = arith.addf %155, %156 : vector<2x55xf32>
    %cst_123 = arith.constant dense<0.000000e+00> : vector<2x55xf32>
    %158 = tpu.matmul %41, %93, %cst_123 {dimension_numbers = #tpu.dot_dimension_numbers<[1], [0], [0], [1], [0, 0, 1, 1], [], []>} : vector<2x2xf32>, vector<2x55xf32>, vector<2x55xf32> -> vector<2x55xf32>
    %159 = arith.addf %157, %158 : vector<2x55xf32>
    %cst_124 = arith.constant dense<0.000000e+00> : vector<2x55xf32>
    %160 = tpu.matmul %25, %84, %cst_124 {dimension_numbers = #tpu.dot_dimension_numbers<[1], [0], [0], [1], [0, 0, 1, 1], [], []>} : vector<2x2xf32>, vector<2x55xf32>, vector<2x55xf32> -> vector<2x55xf32>
    %161 = arith.addf %159, %160 : vector<2x55xf32>
    %cst_125 = arith.constant dense<0.000000e+00> : vector<2x55xf32>
    %162 = tpu.matmul %43, %100, %cst_125 {dimension_numbers = #tpu.dot_dimension_numbers<[1], [0], [0], [1], [0, 0, 1, 1], [], []>} : vector<2x2xf32>, vector<2x55xf32>, vector<2x55xf32> -> vector<2x55xf32>
    %163 = arith.addf %161, %162 : vector<2x55xf32>
    %cst_126 = arith.constant dense<0.000000e+00> : vector<2x55xf32>
    %164 = tpu.matmul %27, %81, %cst_126 {dimension_numbers = #tpu.dot_dimension_numbers<[1], [0], [0], [1], [0, 0, 1, 1], [], []>} : vector<2x2xf32>, vector<2x55xf32>, vector<2x55xf32> -> vector<2x55xf32>
    %165 = arith.addf %163, %164 : vector<2x55xf32>
    %cst_127 = arith.constant dense<0.000000e+00> : vector<2x55xf32>
    %166 = tpu.matmul %45, %97, %cst_127 {dimension_numbers = #tpu.dot_dimension_numbers<[1], [0], [0], [1], [0, 0, 1, 1], [], []>} : vector<2x2xf32>, vector<2x55xf32>, vector<2x55xf32> -> vector<2x55xf32>
    %167 = arith.addf %165, %166 : vector<2x55xf32>
    %cst_128 = arith.constant dense<0.000000e+00> : vector<2x55xf32>
    %168 = tpu.matmul %29, %85, %cst_128 {dimension_numbers = #tpu.dot_dimension_numbers<[1], [0], [0], [1], [0, 0, 1, 1], [], []>} : vector<2x2xf32>, vector<2x55xf32>, vector<2x55xf32> -> vector<2x55xf32>
    %169 = arith.addf %167, %168 : vector<2x55xf32>
    %cst_129 = arith.constant dense<0.000000e+00> : vector<2x55xf32>
    %170 = tpu.matmul %47, %101, %cst_129 {dimension_numbers = #tpu.dot_dimension_numbers<[1], [0], [0], [1], [0, 0, 1, 1], [], []>} : vector<2x2xf32>, vector<2x55xf32>, vector<2x55xf32> -> vector<2x55xf32>
    %171 = arith.addf %169, %170 : vector<2x55xf32>
    %cst_130 = arith.constant dense<0.000000e+00> : vector<2x55xf32>
    %172 = tpu.matmul %31, %78, %cst_130 {dimension_numbers = #tpu.dot_dimension_numbers<[1], [0], [0], [1], [0, 0, 1, 1], [], []>} : vector<2x2xf32>, vector<2x55xf32>, vector<2x55xf32> -> vector<2x55xf32>
    %173 = arith.addf %171, %172 : vector<2x55xf32>
    %cst_131 = arith.constant dense<0.000000e+00> : vector<2x55xf32>
    %174 = tpu.matmul %49, %94, %cst_131 {dimension_numbers = #tpu.dot_dimension_numbers<[1], [0], [0], [1], [0, 0, 1, 1], [], []>} : vector<2x2xf32>, vector<2x55xf32>, vector<2x55xf32> -> vector<2x55xf32>
    %175 = arith.addf %173, %174 : vector<2x55xf32>
    %cst_132 = arith.constant dense<0.000000e+00> : vector<2x55xf32>
    %176 = tpu.matmul %33, %75, %cst_132 {dimension_numbers = #tpu.dot_dimension_numbers<[1], [0], [0], [1], [0, 0, 1, 1], [], []>} : vector<2x2xf32>, vector<2x55xf32>, vector<2x55xf32> -> vector<2x55xf32>
    %177 = arith.addf %175, %176 : vector<2x55xf32>
    %cst_133 = arith.constant dense<0.000000e+00> : vector<2x55xf32>
    %178 = tpu.matmul %51, %91, %cst_133 {dimension_numbers = #tpu.dot_dimension_numbers<[1], [0], [0], [1], [0, 0, 1, 1], [], []>} : vector<2x2xf32>, vector<2x55xf32>, vector<2x55xf32> -> vector<2x55xf32>
    %179 = arith.addf %177, %178 : vector<2x55xf32>
    %cst_134 = arith.constant dense<0.000000e+00> : vector<2x55xf32>
    %180 = tpu.matmul %35, %79, %cst_134 {dimension_numbers = #tpu.dot_dimension_numbers<[1], [0], [0], [1], [0, 0, 1, 1], [], []>} : vector<2x2xf32>, vector<2x55xf32>, vector<2x55xf32> -> vector<2x55xf32>
    %181 = arith.addf %179, %180 : vector<2x55xf32>
    %cst_135 = arith.constant dense<0.000000e+00> : vector<2x55xf32>
    %182 = tpu.matmul %53, %95, %cst_135 {dimension_numbers = #tpu.dot_dimension_numbers<[1], [0], [0], [1], [0, 0, 1, 1], [], []>} : vector<2x2xf32>, vector<2x55xf32>, vector<2x55xf32> -> vector<2x55xf32>
    %183 = arith.addf %181, %182 : vector<2x55xf32>
    %cst_136 = arith.constant 0.000000e+00 : f32
    %184 = vector.broadcast %cst_136 : f32 to vector<2x55xf32>
    %185 = arith.maximumf %183, %184 : vector<2x55xf32>
    %cst_137 = arith.constant 0.000000e+00 : f32
    %186 = vector.broadcast %cst_137 : f32 to vector<2x55xf32>
    %187 = vector.broadcast %16 : vector<2x1xf32> to vector<2x55xf32>
    %188 = arith.addf %186, %187 : vector<2x55xf32>
    %cst_138 = arith.constant dense<0.000000e+00> : vector<2x55xf32>
    %189 = tpu.matmul %19, %80, %cst_138 {dimension_numbers = #tpu.dot_dimension_numbers<[1], [0], [0], [1], [0, 0, 1, 1], [], []>} : vector<2x2xf32>, vector<2x55xf32>, vector<2x55xf32> -> vector<2x55xf32>
    %190 = arith.addf %188, %189 : vector<2x55xf32>
    %cst_139 = arith.constant dense<0.000000e+00> : vector<2x55xf32>
    %191 = tpu.matmul %37, %96, %cst_139 {dimension_numbers = #tpu.dot_dimension_numbers<[1], [0], [0], [1], [0, 0, 1, 1], [], []>} : vector<2x2xf32>, vector<2x55xf32>, vector<2x55xf32> -> vector<2x55xf32>
    %192 = arith.addf %190, %191 : vector<2x55xf32>
    %cst_140 = arith.constant dense<0.000000e+00> : vector<2x55xf32>
    %193 = tpu.matmul %21, %84, %cst_140 {dimension_numbers = #tpu.dot_dimension_numbers<[1], [0], [0], [1], [0, 0, 1, 1], [], []>} : vector<2x2xf32>, vector<2x55xf32>, vector<2x55xf32> -> vector<2x55xf32>
    %194 = arith.addf %192, %193 : vector<2x55xf32>
    %cst_141 = arith.constant dense<0.000000e+00> : vector<2x55xf32>
    %195 = tpu.matmul %39, %100, %cst_141 {dimension_numbers = #tpu.dot_dimension_numbers<[1], [0], [0], [1], [0, 0, 1, 1], [], []>} : vector<2x2xf32>, vector<2x55xf32>, vector<2x55xf32> -> vector<2x55xf32>
    %196 = arith.addf %194, %195 : vector<2x55xf32>
    %cst_142 = arith.constant dense<0.000000e+00> : vector<2x55xf32>
    %197 = tpu.matmul %23, %81, %cst_142 {dimension_numbers = #tpu.dot_dimension_numbers<[1], [0], [0], [1], [0, 0, 1, 1], [], []>} : vector<2x2xf32>, vector<2x55xf32>, vector<2x55xf32> -> vector<2x55xf32>
    %198 = arith.addf %196, %197 : vector<2x55xf32>
    %cst_143 = arith.constant dense<0.000000e+00> : vector<2x55xf32>
    %199 = tpu.matmul %41, %97, %cst_143 {dimension_numbers = #tpu.dot_dimension_numbers<[1], [0], [0], [1], [0, 0, 1, 1], [], []>} : vector<2x2xf32>, vector<2x55xf32>, vector<2x55xf32> -> vector<2x55xf32>
    %200 = arith.addf %198, %199 : vector<2x55xf32>
    %cst_144 = arith.constant dense<0.000000e+00> : vector<2x55xf32>
    %201 = tpu.matmul %25, %74, %cst_144 {dimension_numbers = #tpu.dot_dimension_numbers<[1], [0], [0], [1], [0, 0, 1, 1], [], []>} : vector<2x2xf32>, vector<2x55xf32>, vector<2x55xf32> -> vector<2x55xf32>
    %202 = arith.addf %200, %201 : vector<2x55xf32>
    %cst_145 = arith.constant dense<0.000000e+00> : vector<2x55xf32>
    %203 = tpu.matmul %43, %90, %cst_145 {dimension_numbers = #tpu.dot_dimension_numbers<[1], [0], [0], [1], [0, 0, 1, 1], [], []>} : vector<2x2xf32>, vector<2x55xf32>, vector<2x55xf32> -> vector<2x55xf32>
    %204 = arith.addf %202, %203 : vector<2x55xf32>
    %cst_146 = arith.constant dense<0.000000e+00> : vector<2x55xf32>
    %205 = tpu.matmul %27, %78, %cst_146 {dimension_numbers = #tpu.dot_dimension_numbers<[1], [0], [0], [1], [0, 0, 1, 1], [], []>} : vector<2x2xf32>, vector<2x55xf32>, vector<2x55xf32> -> vector<2x55xf32>
    %206 = arith.addf %204, %205 : vector<2x55xf32>
    %cst_147 = arith.constant dense<0.000000e+00> : vector<2x55xf32>
    %207 = tpu.matmul %45, %94, %cst_147 {dimension_numbers = #tpu.dot_dimension_numbers<[1], [0], [0], [1], [0, 0, 1, 1], [], []>} : vector<2x2xf32>, vector<2x55xf32>, vector<2x55xf32> -> vector<2x55xf32>
    %208 = arith.addf %206, %207 : vector<2x55xf32>
    %cst_148 = arith.constant dense<0.000000e+00> : vector<2x55xf32>
    %209 = tpu.matmul %29, %75, %cst_148 {dimension_numbers = #tpu.dot_dimension_numbers<[1], [0], [0], [1], [0, 0, 1, 1], [], []>} : vector<2x2xf32>, vector<2x55xf32>, vector<2x55xf32> -> vector<2x55xf32>
    %210 = arith.addf %208, %209 : vector<2x55xf32>
    %cst_149 = arith.constant dense<0.000000e+00> : vector<2x55xf32>
    %211 = tpu.matmul %47, %91, %cst_149 {dimension_numbers = #tpu.dot_dimension_numbers<[1], [0], [0], [1], [0, 0, 1, 1], [], []>} : vector<2x2xf32>, vector<2x55xf32>, vector<2x55xf32> -> vector<2x55xf32>
    %212 = arith.addf %210, %211 : vector<2x55xf32>
    %cst_150 = arith.constant dense<0.000000e+00> : vector<2x55xf32>
    %213 = tpu.matmul %31, %82, %cst_150 {dimension_numbers = #tpu.dot_dimension_numbers<[1], [0], [0], [1], [0, 0, 1, 1], [], []>} : vector<2x2xf32>, vector<2x55xf32>, vector<2x55xf32> -> vector<2x55xf32>
    %214 = arith.addf %212, %213 : vector<2x55xf32>
    %cst_151 = arith.constant dense<0.000000e+00> : vector<2x55xf32>
    %215 = tpu.matmul %49, %98, %cst_151 {dimension_numbers = #tpu.dot_dimension_numbers<[1], [0], [0], [1], [0, 0, 1, 1], [], []>} : vector<2x2xf32>, vector<2x55xf32>, vector<2x55xf32> -> vector<2x55xf32>
    %216 = arith.addf %214, %215 : vector<2x55xf32>
    %cst_152 = arith.constant dense<0.000000e+00> : vector<2x55xf32>
    %217 = tpu.matmul %33, %86, %cst_152 {dimension_numbers = #tpu.dot_dimension_numbers<[1], [0], [0], [1], [0, 0, 1, 1], [], []>} : vector<2x2xf32>, vector<2x55xf32>, vector<2x55xf32> -> vector<2x55xf32>
    %218 = arith.addf %216, %217 : vector<2x55xf32>
    %cst_153 = arith.constant dense<0.000000e+00> : vector<2x55xf32>
    %219 = tpu.matmul %51, %102, %cst_153 {dimension_numbers = #tpu.dot_dimension_numbers<[1], [0], [0], [1], [0, 0, 1, 1], [], []>} : vector<2x2xf32>, vector<2x55xf32>, vector<2x55xf32> -> vector<2x55xf32>
    %220 = arith.addf %218, %219 : vector<2x55xf32>
    %cst_154 = arith.constant dense<0.000000e+00> : vector<2x55xf32>
    %221 = tpu.matmul %35, %83, %cst_154 {dimension_numbers = #tpu.dot_dimension_numbers<[1], [0], [0], [1], [0, 0, 1, 1], [], []>} : vector<2x2xf32>, vector<2x55xf32>, vector<2x55xf32> -> vector<2x55xf32>
    %222 = arith.addf %220, %221 : vector<2x55xf32>
    %cst_155 = arith.constant dense<0.000000e+00> : vector<2x55xf32>
    %223 = tpu.matmul %53, %99, %cst_155 {dimension_numbers = #tpu.dot_dimension_numbers<[1], [0], [0], [1], [0, 0, 1, 1], [], []>} : vector<2x2xf32>, vector<2x55xf32>, vector<2x55xf32> -> vector<2x55xf32>
    %224 = arith.addf %222, %223 : vector<2x55xf32>
    %cst_156 = arith.constant 0.000000e+00 : f32
    %225 = vector.broadcast %cst_156 : f32 to vector<2x55xf32>
    %226 = arith.maximumf %224, %225 : vector<2x55xf32>
    %cst_157 = arith.constant 0.000000e+00 : f32
    %227 = vector.broadcast %cst_157 : f32 to vector<2x55xf32>
    %228 = vector.broadcast %16 : vector<2x1xf32> to vector<2x55xf32>
    %229 = arith.addf %227, %228 : vector<2x55xf32>
    %cst_158 = arith.constant dense<0.000000e+00> : vector<2x55xf32>
    %230 = tpu.matmul %19, %84, %cst_158 {dimension_numbers = #tpu.dot_dimension_numbers<[1], [0], [0], [1], [0, 0, 1, 1], [], []>} : vector<2x2xf32>, vector<2x55xf32>, vector<2x55xf32> -> vector<2x55xf32>
    %231 = arith.addf %229, %230 : vector<2x55xf32>
    %cst_159 = arith.constant dense<0.000000e+00> : vector<2x55xf32>
    %232 = tpu.matmul %37, %100, %cst_159 {dimension_numbers = #tpu.dot_dimension_numbers<[1], [0], [0], [1], [0, 0, 1, 1], [], []>} : vector<2x2xf32>, vector<2x55xf32>, vector<2x55xf32> -> vector<2x55xf32>
    %233 = arith.addf %231, %232 : vector<2x55xf32>
    %cst_160 = arith.constant dense<0.000000e+00> : vector<2x55xf32>
    %234 = tpu.matmul %21, %81, %cst_160 {dimension_numbers = #tpu.dot_dimension_numbers<[1], [0], [0], [1], [0, 0, 1, 1], [], []>} : vector<2x2xf32>, vector<2x55xf32>, vector<2x55xf32> -> vector<2x55xf32>
    %235 = arith.addf %233, %234 : vector<2x55xf32>
    %cst_161 = arith.constant dense<0.000000e+00> : vector<2x55xf32>
    %236 = tpu.matmul %39, %97, %cst_161 {dimension_numbers = #tpu.dot_dimension_numbers<[1], [0], [0], [1], [0, 0, 1, 1], [], []>} : vector<2x2xf32>, vector<2x55xf32>, vector<2x55xf32> -> vector<2x55xf32>
    %237 = arith.addf %235, %236 : vector<2x55xf32>
    %cst_162 = arith.constant dense<0.000000e+00> : vector<2x55xf32>
    %238 = tpu.matmul %23, %85, %cst_162 {dimension_numbers = #tpu.dot_dimension_numbers<[1], [0], [0], [1], [0, 0, 1, 1], [], []>} : vector<2x2xf32>, vector<2x55xf32>, vector<2x55xf32> -> vector<2x55xf32>
    %239 = arith.addf %237, %238 : vector<2x55xf32>
    %cst_163 = arith.constant dense<0.000000e+00> : vector<2x55xf32>
    %240 = tpu.matmul %41, %101, %cst_163 {dimension_numbers = #tpu.dot_dimension_numbers<[1], [0], [0], [1], [0, 0, 1, 1], [], []>} : vector<2x2xf32>, vector<2x55xf32>, vector<2x55xf32> -> vector<2x55xf32>
    %241 = arith.addf %239, %240 : vector<2x55xf32>
    %cst_164 = arith.constant dense<0.000000e+00> : vector<2x55xf32>
    %242 = tpu.matmul %25, %78, %cst_164 {dimension_numbers = #tpu.dot_dimension_numbers<[1], [0], [0], [1], [0, 0, 1, 1], [], []>} : vector<2x2xf32>, vector<2x55xf32>, vector<2x55xf32> -> vector<2x55xf32>
    %243 = arith.addf %241, %242 : vector<2x55xf32>
    %cst_165 = arith.constant dense<0.000000e+00> : vector<2x55xf32>
    %244 = tpu.matmul %43, %94, %cst_165 {dimension_numbers = #tpu.dot_dimension_numbers<[1], [0], [0], [1], [0, 0, 1, 1], [], []>} : vector<2x2xf32>, vector<2x55xf32>, vector<2x55xf32> -> vector<2x55xf32>
    %245 = arith.addf %243, %244 : vector<2x55xf32>
    %cst_166 = arith.constant dense<0.000000e+00> : vector<2x55xf32>
    %246 = tpu.matmul %27, %75, %cst_166 {dimension_numbers = #tpu.dot_dimension_numbers<[1], [0], [0], [1], [0, 0, 1, 1], [], []>} : vector<2x2xf32>, vector<2x55xf32>, vector<2x55xf32> -> vector<2x55xf32>
    %247 = arith.addf %245, %246 : vector<2x55xf32>
    %cst_167 = arith.constant dense<0.000000e+00> : vector<2x55xf32>
    %248 = tpu.matmul %45, %91, %cst_167 {dimension_numbers = #tpu.dot_dimension_numbers<[1], [0], [0], [1], [0, 0, 1, 1], [], []>} : vector<2x2xf32>, vector<2x55xf32>, vector<2x55xf32> -> vector<2x55xf32>
    %249 = arith.addf %247, %248 : vector<2x55xf32>
    %cst_168 = arith.constant dense<0.000000e+00> : vector<2x55xf32>
    %250 = tpu.matmul %29, %79, %cst_168 {dimension_numbers = #tpu.dot_dimension_numbers<[1], [0], [0], [1], [0, 0, 1, 1], [], []>} : vector<2x2xf32>, vector<2x55xf32>, vector<2x55xf32> -> vector<2x55xf32>
    %251 = arith.addf %249, %250 : vector<2x55xf32>
    %cst_169 = arith.constant dense<0.000000e+00> : vector<2x55xf32>
    %252 = tpu.matmul %47, %95, %cst_169 {dimension_numbers = #tpu.dot_dimension_numbers<[1], [0], [0], [1], [0, 0, 1, 1], [], []>} : vector<2x2xf32>, vector<2x55xf32>, vector<2x55xf32> -> vector<2x55xf32>
    %253 = arith.addf %251, %252 : vector<2x55xf32>
    %cst_170 = arith.constant dense<0.000000e+00> : vector<2x55xf32>
    %254 = tpu.matmul %31, %86, %cst_170 {dimension_numbers = #tpu.dot_dimension_numbers<[1], [0], [0], [1], [0, 0, 1, 1], [], []>} : vector<2x2xf32>, vector<2x55xf32>, vector<2x55xf32> -> vector<2x55xf32>
    %255 = arith.addf %253, %254 : vector<2x55xf32>
    %cst_171 = arith.constant dense<0.000000e+00> : vector<2x55xf32>
    %256 = tpu.matmul %49, %102, %cst_171 {dimension_numbers = #tpu.dot_dimension_numbers<[1], [0], [0], [1], [0, 0, 1, 1], [], []>} : vector<2x2xf32>, vector<2x55xf32>, vector<2x55xf32> -> vector<2x55xf32>
    %257 = arith.addf %255, %256 : vector<2x55xf32>
    %cst_172 = arith.constant dense<0.000000e+00> : vector<2x55xf32>
    %258 = tpu.matmul %33, %83, %cst_172 {dimension_numbers = #tpu.dot_dimension_numbers<[1], [0], [0], [1], [0, 0, 1, 1], [], []>} : vector<2x2xf32>, vector<2x55xf32>, vector<2x55xf32> -> vector<2x55xf32>
    %259 = arith.addf %257, %258 : vector<2x55xf32>
    %cst_173 = arith.constant dense<0.000000e+00> : vector<2x55xf32>
    %260 = tpu.matmul %51, %99, %cst_173 {dimension_numbers = #tpu.dot_dimension_numbers<[1], [0], [0], [1], [0, 0, 1, 1], [], []>} : vector<2x2xf32>, vector<2x55xf32>, vector<2x55xf32> -> vector<2x55xf32>
    %261 = arith.addf %259, %260 : vector<2x55xf32>
    %cst_174 = arith.constant dense<0.000000e+00> : vector<2x55xf32>
    %262 = tpu.matmul %35, %87, %cst_174 {dimension_numbers = #tpu.dot_dimension_numbers<[1], [0], [0], [1], [0, 0, 1, 1], [], []>} : vector<2x2xf32>, vector<2x55xf32>, vector<2x55xf32> -> vector<2x55xf32>
    %263 = arith.addf %261, %262 : vector<2x55xf32>
    %cst_175 = arith.constant dense<0.000000e+00> : vector<2x55xf32>
    %264 = tpu.matmul %53, %103, %cst_175 {dimension_numbers = #tpu.dot_dimension_numbers<[1], [0], [0], [1], [0, 0, 1, 1], [], []>} : vector<2x2xf32>, vector<2x55xf32>, vector<2x55xf32> -> vector<2x55xf32>
    %265 = arith.addf %263, %264 : vector<2x55xf32>
    %cst_176 = arith.constant 0.000000e+00 : f32
    %266 = vector.broadcast %cst_176 : f32 to vector<2x55xf32>
    %267 = arith.maximumf %265, %266 : vector<2x55xf32>
    %268 = vector.extract_strided_slice %144 {offsets = [0, 0], sizes = [2, 46], strides = [1, 1]} : vector<2x55xf32> to vector<2x46xf32>
    %269 = vector.extract_strided_slice %144 {offsets = [0, 1], sizes = [2, 46], strides = [1, 1]} : vector<2x55xf32> to vector<2x46xf32>
    %270 = vector.extract_strided_slice %144 {offsets = [0, 8], sizes = [2, 46], strides = [1, 1]} : vector<2x55xf32> to vector<2x46xf32>
    %271 = vector.extract_strided_slice %144 {offsets = [0, 9], sizes = [2, 46], strides = [1, 1]} : vector<2x55xf32> to vector<2x46xf32>
    %272 = vector.extract_strided_slice %185 {offsets = [0, 0], sizes = [2, 46], strides = [1, 1]} : vector<2x55xf32> to vector<2x46xf32>
    %273 = vector.extract_strided_slice %185 {offsets = [0, 1], sizes = [2, 46], strides = [1, 1]} : vector<2x55xf32> to vector<2x46xf32>
    %274 = vector.extract_strided_slice %185 {offsets = [0, 8], sizes = [2, 46], strides = [1, 1]} : vector<2x55xf32> to vector<2x46xf32>
    %275 = vector.extract_strided_slice %185 {offsets = [0, 9], sizes = [2, 46], strides = [1, 1]} : vector<2x55xf32> to vector<2x46xf32>
    %276 = vector.extract_strided_slice %226 {offsets = [0, 0], sizes = [2, 46], strides = [1, 1]} : vector<2x55xf32> to vector<2x46xf32>
    %277 = vector.extract_strided_slice %226 {offsets = [0, 1], sizes = [2, 46], strides = [1, 1]} : vector<2x55xf32> to vector<2x46xf32>
    %278 = vector.extract_strided_slice %226 {offsets = [0, 8], sizes = [2, 46], strides = [1, 1]} : vector<2x55xf32> to vector<2x46xf32>
    %279 = vector.extract_strided_slice %226 {offsets = [0, 9], sizes = [2, 46], strides = [1, 1]} : vector<2x55xf32> to vector<2x46xf32>
    %280 = vector.extract_strided_slice %267 {offsets = [0, 0], sizes = [2, 46], strides = [1, 1]} : vector<2x55xf32> to vector<2x46xf32>
    %281 = vector.extract_strided_slice %267 {offsets = [0, 1], sizes = [2, 46], strides = [1, 1]} : vector<2x55xf32> to vector<2x46xf32>
    %282 = vector.extract_strided_slice %267 {offsets = [0, 8], sizes = [2, 46], strides = [1, 1]} : vector<2x55xf32> to vector<2x46xf32>
    %283 = vector.extract_strided_slice %267 {offsets = [0, 9], sizes = [2, 46], strides = [1, 1]} : vector<2x55xf32> to vector<2x46xf32>
    %cst_177 = arith.constant 0.000000e+00 : f32
    %284 = vector.broadcast %cst_177 : f32 to vector<2x46xf32>
    %285 = vector.broadcast %17 : vector<2x1xf32> to vector<2x46xf32>
    %286 = arith.addf %284, %285 : vector<2x46xf32>
    %cst_178 = arith.constant dense<0.000000e+00> : vector<2x46xf32>
    %287 = tpu.matmul %55, %268, %cst_178 {dimension_numbers = #tpu.dot_dimension_numbers<[1], [0], [0], [1], [0, 0, 1, 1], [], []>} : vector<2x2xf32>, vector<2x46xf32>, vector<2x46xf32> -> vector<2x46xf32>
    %288 = arith.addf %286, %287 : vector<2x46xf32>
    %cst_179 = arith.constant dense<0.000000e+00> : vector<2x46xf32>
    %289 = tpu.matmul %57, %272, %cst_179 {dimension_numbers = #tpu.dot_dimension_numbers<[1], [0], [0], [1], [0, 0, 1, 1], [], []>} : vector<2x2xf32>, vector<2x46xf32>, vector<2x46xf32> -> vector<2x46xf32>
    %290 = arith.addf %288, %289 : vector<2x46xf32>
    %cst_180 = arith.constant dense<0.000000e+00> : vector<2x46xf32>
    %291 = tpu.matmul %59, %269, %cst_180 {dimension_numbers = #tpu.dot_dimension_numbers<[1], [0], [0], [1], [0, 0, 1, 1], [], []>} : vector<2x2xf32>, vector<2x46xf32>, vector<2x46xf32> -> vector<2x46xf32>
    %292 = arith.addf %290, %291 : vector<2x46xf32>
    %cst_181 = arith.constant dense<0.000000e+00> : vector<2x46xf32>
    %293 = tpu.matmul %61, %276, %cst_181 {dimension_numbers = #tpu.dot_dimension_numbers<[1], [0], [0], [1], [0, 0, 1, 1], [], []>} : vector<2x2xf32>, vector<2x46xf32>, vector<2x46xf32> -> vector<2x46xf32>
    %294 = arith.addf %292, %293 : vector<2x46xf32>
    %cst_182 = arith.constant dense<0.000000e+00> : vector<2x46xf32>
    %295 = tpu.matmul %63, %280, %cst_182 {dimension_numbers = #tpu.dot_dimension_numbers<[1], [0], [0], [1], [0, 0, 1, 1], [], []>} : vector<2x2xf32>, vector<2x46xf32>, vector<2x46xf32> -> vector<2x46xf32>
    %296 = arith.addf %294, %295 : vector<2x46xf32>
    %cst_183 = arith.constant dense<0.000000e+00> : vector<2x46xf32>
    %297 = tpu.matmul %65, %277, %cst_183 {dimension_numbers = #tpu.dot_dimension_numbers<[1], [0], [0], [1], [0, 0, 1, 1], [], []>} : vector<2x2xf32>, vector<2x46xf32>, vector<2x46xf32> -> vector<2x46xf32>
    %298 = arith.addf %296, %297 : vector<2x46xf32>
    %cst_184 = arith.constant dense<0.000000e+00> : vector<2x46xf32>
    %299 = tpu.matmul %67, %270, %cst_184 {dimension_numbers = #tpu.dot_dimension_numbers<[1], [0], [0], [1], [0, 0, 1, 1], [], []>} : vector<2x2xf32>, vector<2x46xf32>, vector<2x46xf32> -> vector<2x46xf32>
    %300 = arith.addf %298, %299 : vector<2x46xf32>
    %cst_185 = arith.constant dense<0.000000e+00> : vector<2x46xf32>
    %301 = tpu.matmul %69, %274, %cst_185 {dimension_numbers = #tpu.dot_dimension_numbers<[1], [0], [0], [1], [0, 0, 1, 1], [], []>} : vector<2x2xf32>, vector<2x46xf32>, vector<2x46xf32> -> vector<2x46xf32>
    %302 = arith.addf %300, %301 : vector<2x46xf32>
    %cst_186 = arith.constant dense<0.000000e+00> : vector<2x46xf32>
    %303 = tpu.matmul %71, %271, %cst_186 {dimension_numbers = #tpu.dot_dimension_numbers<[1], [0], [0], [1], [0, 0, 1, 1], [], []>} : vector<2x2xf32>, vector<2x46xf32>, vector<2x46xf32> -> vector<2x46xf32>
    %304 = arith.addf %302, %303 : vector<2x46xf32>
    %cst_187 = arith.constant 0.000000e+00 : f32
    %305 = vector.broadcast %cst_187 : f32 to vector<2x46xf32>
    %306 = arith.maximumf %304, %305 : vector<2x46xf32>
    %c0_188 = arith.constant 0 : index
    %c0_189 = arith.constant 0 : index
    %c0_190 = arith.constant 0 : index
    %c0_191 = arith.constant 0 : index
    %307 = vector.load %arg9[%c0_188, %c0_189, %c0_190, %c0_191] : memref<1x4x2x46xf32, #tpu.memory_space<vmem>>, vector<1x1x2x46xf32>
    %308 = vector.shape_cast %307 : vector<1x1x2x46xf32> to vector<2x46xf32>
    %309 = vector.shape_cast %306 : vector<2x46xf32> to vector<1x1x2x46xf32>
    tpu.vector_store %arg9[%c0_188, %c0_189, %c0_190, %c0_191], %309 {strides = array<i32>} : memref<1x4x2x46xf32, #tpu.memory_space<vmem>>, vector<1x1x2x46xf32>,
    %cst_192 = arith.constant 0.000000e+00 : f32
    %310 = vector.broadcast %cst_192 : f32 to vector<2x46xf32>
    %311 = vector.broadcast %17 : vector<2x1xf32> to vector<2x46xf32>
    %312 = arith.addf %310, %311 : vector<2x46xf32>
    %cst_193 = arith.constant dense<0.000000e+00> : vector<2x46xf32>
    %313 = tpu.matmul %55, %272, %cst_193 {dimension_numbers = #tpu.dot_dimension_numbers<[1], [0], [0], [1], [0, 0, 1, 1], [], []>} : vector<2x2xf32>, vector<2x46xf32>, vector<2x46xf32> -> vector<2x46xf32>
    %314 = arith.addf %312, %313 : vector<2x46xf32>
    %cst_194 = arith.constant dense<0.000000e+00> : vector<2x46xf32>
    %315 = tpu.matmul %57, %269, %cst_194 {dimension_numbers = #tpu.dot_dimension_numbers<[1], [0], [0], [1], [0, 0, 1, 1], [], []>} : vector<2x2xf32>, vector<2x46xf32>, vector<2x46xf32> -> vector<2x46xf32>
    %316 = arith.addf %314, %315 : vector<2x46xf32>
    %cst_195 = arith.constant dense<0.000000e+00> : vector<2x46xf32>
    %317 = tpu.matmul %59, %273, %cst_195 {dimension_numbers = #tpu.dot_dimension_numbers<[1], [0], [0], [1], [0, 0, 1, 1], [], []>} : vector<2x2xf32>, vector<2x46xf32>, vector<2x46xf32> -> vector<2x46xf32>
    %318 = arith.addf %316, %317 : vector<2x46xf32>
    %cst_196 = arith.constant dense<0.000000e+00> : vector<2x46xf32>
    %319 = tpu.matmul %61, %280, %cst_196 {dimension_numbers = #tpu.dot_dimension_numbers<[1], [0], [0], [1], [0, 0, 1, 1], [], []>} : vector<2x2xf32>, vector<2x46xf32>, vector<2x46xf32> -> vector<2x46xf32>
    %320 = arith.addf %318, %319 : vector<2x46xf32>
    %cst_197 = arith.constant dense<0.000000e+00> : vector<2x46xf32>
    %321 = tpu.matmul %63, %277, %cst_197 {dimension_numbers = #tpu.dot_dimension_numbers<[1], [0], [0], [1], [0, 0, 1, 1], [], []>} : vector<2x2xf32>, vector<2x46xf32>, vector<2x46xf32> -> vector<2x46xf32>
    %322 = arith.addf %320, %321 : vector<2x46xf32>
    %cst_198 = arith.constant dense<0.000000e+00> : vector<2x46xf32>
    %323 = tpu.matmul %65, %281, %cst_198 {dimension_numbers = #tpu.dot_dimension_numbers<[1], [0], [0], [1], [0, 0, 1, 1], [], []>} : vector<2x2xf32>, vector<2x46xf32>, vector<2x46xf32> -> vector<2x46xf32>
    %324 = arith.addf %322, %323 : vector<2x46xf32>
    %cst_199 = arith.constant dense<0.000000e+00> : vector<2x46xf32>
    %325 = tpu.matmul %67, %274, %cst_199 {dimension_numbers = #tpu.dot_dimension_numbers<[1], [0], [0], [1], [0, 0, 1, 1], [], []>} : vector<2x2xf32>, vector<2x46xf32>, vector<2x46xf32> -> vector<2x46xf32>
    %326 = arith.addf %324, %325 : vector<2x46xf32>
    %cst_200 = arith.constant dense<0.000000e+00> : vector<2x46xf32>
    %327 = tpu.matmul %69, %271, %cst_200 {dimension_numbers = #tpu.dot_dimension_numbers<[1], [0], [0], [1], [0, 0, 1, 1], [], []>} : vector<2x2xf32>, vector<2x46xf32>, vector<2x46xf32> -> vector<2x46xf32>
    %328 = arith.addf %326, %327 : vector<2x46xf32>
    %cst_201 = arith.constant dense<0.000000e+00> : vector<2x46xf32>
    %329 = tpu.matmul %71, %275, %cst_201 {dimension_numbers = #tpu.dot_dimension_numbers<[1], [0], [0], [1], [0, 0, 1, 1], [], []>} : vector<2x2xf32>, vector<2x46xf32>, vector<2x46xf32> -> vector<2x46xf32>
    %330 = arith.addf %328, %329 : vector<2x46xf32>
    %cst_202 = arith.constant 0.000000e+00 : f32
    %331 = vector.broadcast %cst_202 : f32 to vector<2x46xf32>
    %332 = arith.maximumf %330, %331 : vector<2x46xf32>
    %c0_203 = arith.constant 0 : index
    %c1_204 = arith.constant 1 : index
    %c0_205 = arith.constant 0 : index
    %c0_206 = arith.constant 0 : index
    %333 = vector.load %arg9[%c0_203, %c1_204, %c0_205, %c0_206] : memref<1x4x2x46xf32, #tpu.memory_space<vmem>>, vector<1x1x2x46xf32>
    %334 = vector.shape_cast %333 : vector<1x1x2x46xf32> to vector<2x46xf32>
    %335 = vector.shape_cast %332 : vector<2x46xf32> to vector<1x1x2x46xf32>
    tpu.vector_store %arg9[%c0_203, %c1_204, %c0_205, %c0_206], %335 {strides = array<i32>} : memref<1x4x2x46xf32, #tpu.memory_space<vmem>>, vector<1x1x2x46xf32>,
    %cst_207 = arith.constant 0.000000e+00 : f32
    %336 = vector.broadcast %cst_207 : f32 to vector<2x46xf32>
    %337 = vector.broadcast %17 : vector<2x1xf32> to vector<2x46xf32>
    %338 = arith.addf %336, %337 : vector<2x46xf32>
    %cst_208 = arith.constant dense<0.000000e+00> : vector<2x46xf32>
    %339 = tpu.matmul %55, %276, %cst_208 {dimension_numbers = #tpu.dot_dimension_numbers<[1], [0], [0], [1], [0, 0, 1, 1], [], []>} : vector<2x2xf32>, vector<2x46xf32>, vector<2x46xf32> -> vector<2x46xf32>
    %340 = arith.addf %338, %339 : vector<2x46xf32>
    %cst_209 = arith.constant dense<0.000000e+00> : vector<2x46xf32>
    %341 = tpu.matmul %57, %280, %cst_209 {dimension_numbers = #tpu.dot_dimension_numbers<[1], [0], [0], [1], [0, 0, 1, 1], [], []>} : vector<2x2xf32>, vector<2x46xf32>, vector<2x46xf32> -> vector<2x46xf32>
    %342 = arith.addf %340, %341 : vector<2x46xf32>
    %cst_210 = arith.constant dense<0.000000e+00> : vector<2x46xf32>
    %343 = tpu.matmul %59, %277, %cst_210 {dimension_numbers = #tpu.dot_dimension_numbers<[1], [0], [0], [1], [0, 0, 1, 1], [], []>} : vector<2x2xf32>, vector<2x46xf32>, vector<2x46xf32> -> vector<2x46xf32>
    %344 = arith.addf %342, %343 : vector<2x46xf32>
    %cst_211 = arith.constant dense<0.000000e+00> : vector<2x46xf32>
    %345 = tpu.matmul %61, %270, %cst_211 {dimension_numbers = #tpu.dot_dimension_numbers<[1], [0], [0], [1], [0, 0, 1, 1], [], []>} : vector<2x2xf32>, vector<2x46xf32>, vector<2x46xf32> -> vector<2x46xf32>
    %346 = arith.addf %344, %345 : vector<2x46xf32>
    %cst_212 = arith.constant dense<0.000000e+00> : vector<2x46xf32>
    %347 = tpu.matmul %63, %274, %cst_212 {dimension_numbers = #tpu.dot_dimension_numbers<[1], [0], [0], [1], [0, 0, 1, 1], [], []>} : vector<2x2xf32>, vector<2x46xf32>, vector<2x46xf32> -> vector<2x46xf32>
    %348 = arith.addf %346, %347 : vector<2x46xf32>
    %cst_213 = arith.constant dense<0.000000e+00> : vector<2x46xf32>
    %349 = tpu.matmul %65, %271, %cst_213 {dimension_numbers = #tpu.dot_dimension_numbers<[1], [0], [0], [1], [0, 0, 1, 1], [], []>} : vector<2x2xf32>, vector<2x46xf32>, vector<2x46xf32> -> vector<2x46xf32>
    %350 = arith.addf %348, %349 : vector<2x46xf32>
    %cst_214 = arith.constant dense<0.000000e+00> : vector<2x46xf32>
    %351 = tpu.matmul %67, %278, %cst_214 {dimension_numbers = #tpu.dot_dimension_numbers<[1], [0], [0], [1], [0, 0, 1, 1], [], []>} : vector<2x2xf32>, vector<2x46xf32>, vector<2x46xf32> -> vector<2x46xf32>
    %352 = arith.addf %350, %351 : vector<2x46xf32>
    %cst_215 = arith.constant dense<0.000000e+00> : vector<2x46xf32>
    %353 = tpu.matmul %69, %282, %cst_215 {dimension_numbers = #tpu.dot_dimension_numbers<[1], [0], [0], [1], [0, 0, 1, 1], [], []>} : vector<2x2xf32>, vector<2x46xf32>, vector<2x46xf32> -> vector<2x46xf32>
    %354 = arith.addf %352, %353 : vector<2x46xf32>
    %cst_216 = arith.constant dense<0.000000e+00> : vector<2x46xf32>
    %355 = tpu.matmul %71, %279, %cst_216 {dimension_numbers = #tpu.dot_dimension_numbers<[1], [0], [0], [1], [0, 0, 1, 1], [], []>} : vector<2x2xf32>, vector<2x46xf32>, vector<2x46xf32> -> vector<2x46xf32>
    %356 = arith.addf %354, %355 : vector<2x46xf32>
    %cst_217 = arith.constant 0.000000e+00 : f32
    %357 = vector.broadcast %cst_217 : f32 to vector<2x46xf32>
    %358 = arith.maximumf %356, %357 : vector<2x46xf32>
    %c0_218 = arith.constant 0 : index
    %c2_219 = arith.constant 2 : index
    %c0_220 = arith.constant 0 : index
    %c0_221 = arith.constant 0 : index
    %359 = vector.load %arg9[%c0_218, %c2_219, %c0_220, %c0_221] : memref<1x4x2x46xf32, #tpu.memory_space<vmem>>, vector<1x1x2x46xf32>
    %360 = vector.shape_cast %359 : vector<1x1x2x46xf32> to vector<2x46xf32>
    %361 = vector.shape_cast %358 : vector<2x46xf32> to vector<1x1x2x46xf32>
    tpu.vector_store %arg9[%c0_218, %c2_219, %c0_220, %c0_221], %361 {strides = array<i32>} : memref<1x4x2x46xf32, #tpu.memory_space<vmem>>, vector<1x1x2x46xf32>,
    %cst_222 = arith.constant 0.000000e+00 : f32
    %362 = vector.broadcast %cst_222 : f32 to vector<2x46xf32>
    %363 = vector.broadcast %17 : vector<2x1xf32> to vector<2x46xf32>
    %364 = arith.addf %362, %363 : vector<2x46xf32>
    %cst_223 = arith.constant dense<0.000000e+00> : vector<2x46xf32>
    %365 = tpu.matmul %55, %280, %cst_223 {dimension_numbers = #tpu.dot_dimension_numbers<[1], [0], [0], [1], [0, 0, 1, 1], [], []>} : vector<2x2xf32>, vector<2x46xf32>, vector<2x46xf32> -> vector<2x46xf32>
    %366 = arith.addf %364, %365 : vector<2x46xf32>
    %cst_224 = arith.constant dense<0.000000e+00> : vector<2x46xf32>
    %367 = tpu.matmul %57, %277, %cst_224 {dimension_numbers = #tpu.dot_dimension_numbers<[1], [0], [0], [1], [0, 0, 1, 1], [], []>} : vector<2x2xf32>, vector<2x46xf32>, vector<2x46xf32> -> vector<2x46xf32>
    %368 = arith.addf %366, %367 : vector<2x46xf32>
    %cst_225 = arith.constant dense<0.000000e+00> : vector<2x46xf32>
    %369 = tpu.matmul %59, %281, %cst_225 {dimension_numbers = #tpu.dot_dimension_numbers<[1], [0], [0], [1], [0, 0, 1, 1], [], []>} : vector<2x2xf32>, vector<2x46xf32>, vector<2x46xf32> -> vector<2x46xf32>
    %370 = arith.addf %368, %369 : vector<2x46xf32>
    %cst_226 = arith.constant dense<0.000000e+00> : vector<2x46xf32>
    %371 = tpu.matmul %61, %274, %cst_226 {dimension_numbers = #tpu.dot_dimension_numbers<[1], [0], [0], [1], [0, 0, 1, 1], [], []>} : vector<2x2xf32>, vector<2x46xf32>, vector<2x46xf32> -> vector<2x46xf32>
    %372 = arith.addf %370, %371 : vector<2x46xf32>
    %cst_227 = arith.constant dense<0.000000e+00> : vector<2x46xf32>
    %373 = tpu.matmul %63, %271, %cst_227 {dimension_numbers = #tpu.dot_dimension_numbers<[1], [0], [0], [1], [0, 0, 1, 1], [], []>} : vector<2x2xf32>, vector<2x46xf32>, vector<2x46xf32> -> vector<2x46xf32>
    %374 = arith.addf %372, %373 : vector<2x46xf32>
    %cst_228 = arith.constant dense<0.000000e+00> : vector<2x46xf32>
    %375 = tpu.matmul %65, %275, %cst_228 {dimension_numbers = #tpu.dot_dimension_numbers<[1], [0], [0], [1], [0, 0, 1, 1], [], []>} : vector<2x2xf32>, vector<2x46xf32>, vector<2x46xf32> -> vector<2x46xf32>
    %376 = arith.addf %374, %375 : vector<2x46xf32>
    %cst_229 = arith.constant dense<0.000000e+00> : vector<2x46xf32>
    %377 = tpu.matmul %67, %282, %cst_229 {dimension_numbers = #tpu.dot_dimension_numbers<[1], [0], [0], [1], [0, 0, 1, 1], [], []>} : vector<2x2xf32>, vector<2x46xf32>, vector<2x46xf32> -> vector<2x46xf32>
    %378 = arith.addf %376, %377 : vector<2x46xf32>
    %cst_230 = arith.constant dense<0.000000e+00> : vector<2x46xf32>
    %379 = tpu.matmul %69, %279, %cst_230 {dimension_numbers = #tpu.dot_dimension_numbers<[1], [0], [0], [1], [0, 0, 1, 1], [], []>} : vector<2x2xf32>, vector<2x46xf32>, vector<2x46xf32> -> vector<2x46xf32>
    %380 = arith.addf %378, %379 : vector<2x46xf32>
    %cst_231 = arith.constant dense<0.000000e+00> : vector<2x46xf32>
    %381 = tpu.matmul %71, %283, %cst_231 {dimension_numbers = #tpu.dot_dimension_numbers<[1], [0], [0], [1], [0, 0, 1, 1], [], []>} : vector<2x2xf32>, vector<2x46xf32>, vector<2x46xf32> -> vector<2x46xf32>
    %382 = arith.addf %380, %381 : vector<2x46xf32>
    %cst_232 = arith.constant 0.000000e+00 : f32
    %383 = vector.broadcast %cst_232 : f32 to vector<2x46xf32>
    %384 = arith.maximumf %382, %383 : vector<2x46xf32>
    %c0_233 = arith.constant 0 : index
    %c3_234 = arith.constant 3 : index
    %c0_235 = arith.constant 0 : index
    %c0_236 = arith.constant 0 : index
    %385 = vector.load %arg9[%c0_233, %c3_234, %c0_235, %c0_236] : memref<1x4x2x46xf32, #tpu.memory_space<vmem>>, vector<1x1x2x46xf32>
    %386 = vector.shape_cast %385 : vector<1x1x2x46xf32> to vector<2x46xf32>
    %387 = vector.shape_cast %384 : vector<2x46xf32> to vector<1x1x2x46xf32>
    tpu.vector_store %arg9[%c0_233, %c3_234, %c0_235, %c0_236], %387 {strides = array<i32>} : memref<1x4x2x46xf32, #tpu.memory_space<vmem>>, vector<1x1x2x46xf32>,
    return
  }
  func.func @transform_0(%arg0: i32) -> (i32, i32, i32) {
    %c0_i32 = arith.constant 0 : i32
    %c0_i32_0 = arith.constant 0 : i32
    %c0_i32_1 = arith.constant 0 : i32
    return %arg0, %c0_i32, %c0_i32_0 : i32, i32, i32
  }
  func.func @transform_1(%arg0: i32) -> (i32, i32, i32, i32) {
    %c0_i32 = arith.constant 0 : i32
    %c0_i32_0 = arith.constant 0 : i32
    %c0_i32_1 = arith.constant 0 : i32
    %c0_i32_2 = arith.constant 0 : i32
    return %arg0, %c0_i32, %c0_i32_0, %c0_i32_1 : i32, i32, i32, i32
  }
  func.func @transform_2(%arg0: i32) -> (i32, i32) {
    %c0_i32 = arith.constant 0 : i32
    %c0_i32_0 = arith.constant 0 : i32
    %c0_i32_1 = arith.constant 0 : i32
    return %c0_i32, %c0_i32_0 : i32, i32
  }
  func.func @transform_3(%arg0: i32) -> (i32, i32, i32) {
    %c0_i32 = arith.constant 0 : i32
    %c0_i32_0 = arith.constant 0 : i32
    %c0_i32_1 = arith.constant 0 : i32
    %c0_i32_2 = arith.constant 0 : i32
    return %c0_i32, %c0_i32_0, %c0_i32_1 : i32, i32, i32
  }
  func.func @transform_4(%arg0: i32) -> (i32, i32, i32) {
    %c0_i32 = arith.constant 0 : i32
    %c0_i32_0 = arith.constant 0 : i32
    %c0_i32_1 = arith.constant 0 : i32
    %c0_i32_2 = arith.constant 0 : i32
    return %c0_i32, %c0_i32_0, %c0_i32_1 : i32, i32, i32
  }
  func.func @transform_5(%arg0: i32) -> (i32, i32, i32) {
    %c0_i32 = arith.constant 0 : i32
    %c0_i32_0 = arith.constant 0 : i32
    %c0_i32_1 = arith.constant 0 : i32
    %c0_i32_2 = arith.constant 0 : i32
    return %c0_i32, %c0_i32_0, %c0_i32_1 : i32, i32, i32
  }
  func.func @transform_6(%arg0: i32) -> (i32, i32) {
    %c0_i32 = arith.constant 0 : i32
    %c0_i32_0 = arith.constant 0 : i32
    %c0_i32_1 = arith.constant 0 : i32
    return %c0_i32, %c0_i32_0 : i32, i32
  }
  func.func @transform_7(%arg0: i32) -> (i32, i32) {
    %c0_i32 = arith.constant 0 : i32
    %c0_i32_0 = arith.constant 0 : i32
    %c0_i32_1 = arith.constant 0 : i32
    return %c0_i32, %c0_i32_0 : i32, i32
  }
  func.func @transform_8(%arg0: i32) -> (i32, i32, i32, i32) {
    %c0_i32 = arith.constant 0 : i32
    %c0_i32_0 = arith.constant 0 : i32
    %c0_i32_1 = arith.constant 0 : i32
    %c0_i32_2 = arith.constant 0 : i32
    return %arg0, %c0_i32, %c0_i32_0, %c0_i32_1 : i32, i32, i32, i32
  }
}

</mosaic_0001>

<bundles_post_ra>
// kernel: decoder_forward.1
= control target key start
LH: loop header
LB: loop body
LE: loop exit
PB: predicated region body
PF: predicated region fallthrough
CT: control target
= control target key end

     0   :  { %s9796_s27 = smov 0   ;;  %s10773_s0 = inlined_call_operand.vmem [shape: f32[2,4,64], index: 0, kind: input, shape index: {}]   ;;  %s10774_s1 = inlined_call_operand.vmem [shape: f32[2,4,2,64], index: 1, kind: input, shape index: {}]   ;;  %s10775_s2 = inlined_call_operand.vmem [shape: f32[8,4], index: 2, kind: input, shape index: {}]   ;;  %s10776_s3 = inlined_call_operand.vmem [shape: f32[9,2,2], index: 3, kind: input, shape index: {}]   ;;  %s10777_s4 = inlined_call_operand.vmem [shape: f32[9,2,2], index: 4, kind: input, shape index: {}]   ;;  %s10778_s5 = inlined_call_operand.vmem [shape: f32[9,2,2], index: 5, kind: input, shape index: {}]   ;;  %s10779_s6 = inlined_call_operand.vmem [shape: f32[2,1], index: 6, kind: input, shape index: {}]   ;;  %s10780_s7 = inlined_call_operand.vmem [shape: f32[2,1], index: 7, kind: input, shape index: {}]   ;;  %s10781_s8 = inlined_call_operand.vmem [shape: f32[2,4,2,46], index: 8, kind: output, shape index: {}]  }
   0x1 LB: > { %s8489_s28 = sadd.s32 4294967295, %s9743_s27   ;;  %p8493_p0 = scmp.ge.s32.totalorder %s9743_s27, 1  ;;  %s9743_s27 = sphi %s9796_s27, %s18_s27  }
   0x2   : > { %p271_p1 = scmp.lt.s32.totalorder %s9743_s27, 3 }
   0x4   : > { %p272_p2 = pnand %p8493_p0, %p271_p1 }
   0x5   : > { %p309_p3 = scmp.lt.s32.totalorder (!%p272_p2), %s8489_s28, 1  ;;  %v9745_v0 = vmov (!%p272_p2), 0.0   ;;  %vm9746_vm0 = vmmov (!%p272_p2), 0   ;;  %vm329_vm1 = vcmask (!%p272_p2), 1043456   ;;  %v324_v1 = vld [vmem:[%s10775_s2] sm:$0xff] (!%p272_p2)  ;;  %vm325_vm2 = vcmask (!%p272_p2), 31744  }
   0x6   : > { %275 = sbr.rel (%p272_p2) target bundleno = 1247 (0x4df), region = 52  ;;  %8969 = vmatprep.subr.mxu0 (!%p272_p2), %v9745_v0  ;;  %8971 = vmatprep.mubr.msk.f32.mxu0 (!%p272_p2), %vm9746_vm0, %v9745_v0  ;;  %vm473_vm3 = vcmask (!%p272_p2), 1041408   ;;  %v9833_v3 = vld [vmem:[%s10776_s3] sm:$0x3] (!%p272_p2)  ;;  %vm469_vm4 = vcmask (!%p272_p2), 15360   ;;  %s9747_s19 = smov (!%p272_p2), 127  }
   0x7   : > { %8974 = vmatprep.subr.mxu1 (!%p272_p2), %v9745_v0  ;;  %8976 = vmatprep.mubr.msk.f32.mxu1 (!%p272_p2), %vm9746_vm0, %v9745_v0  ;;  %v9858_v10 = vld [vmem:[%s10777_s4] sm:$0x3] (!%p272_p2)  ;;  %s9748_s22 = smov (!%p272_p2), 120   ;;  %v9890_v14 = vld [vmem:[%s10776_s3 + $0x2] sm:$0x3] (!%p272_p2)  ;;  %v9750_v30 = vmov (!%p272_p2), 0  }
   0x8   : > { %v9908_v15 = vld [vmem:[%s10777_s4 + $0x2] sm:$0x3] (!%p272_p2)  ;;  %v9937_v16 = vld [vmem:[%s10776_s3 + $0x4] sm:$0x3] (!%p272_p2)  ;;  %v9976_v21 = vld [vmem:[%s10776_s3 + $0x6] sm:$0x3] (!%p272_p2)  ;;  %9736 = vset.pattern.permute.xlu0 (!%p272_p2), %v9750_v30 }
   0x9   : > { %v9958_v19 = vld [vmem:[%s10777_s4 + $0x4] sm:$0x3] (!%p272_p2)  ;;  %v9994_v23 = vld [vmem:[%s10777_s4 + $0x6] sm:$0x3] (!%p272_p2)  ;;  %v10013_v24 = vld [vmem:[%s10776_s3 + $0x8] sm:$0x3] (!%p272_p2) }
   0xa   : > { %v10032_v25 = vld [vmem:[%s10777_s4 + $0x8] sm:$0x3] (!%p272_p2)  ;;  %v10053_v27 = vld [vmem:[%s10776_s3 + $0xa] sm:$0x3] (!%p272_p2)  ;;  %v410_v33 = vld [vmem:[%s10779_s6] sm:$0x3] (!%p272_p2) }
   0xb   : > { %v10074_v29 = vld [vmem:[%s10777_s4 + $0xa] sm:$0x3] (!%p272_p2)  ;;  %v10100_v34 = vld [vmem:[%s10776_s3 + $0xc] sm:$0x3] (!%p272_p2)  ;;  %v10144_v39 = vld [vmem:[%s10776_s3 + $0xe] sm:$0x3] (!%p272_p2) }
   0xc   : > { %v10123_v37 = vld [vmem:[%s10777_s4 + $0xc] sm:$0x3] (!%p272_p2)  ;;  %v10165_v41 = vld [vmem:[%s10777_s4 + $0xe] sm:$0x3] (!%p272_p2)  ;;  %v10186_v43 = vld [vmem:[%s10776_s3 + $0x10] sm:$0x3] (!%p272_p2) }
   0xd   : > { %s10783_s28 = smov (!%p309_p3, %s8489_s28), 1  ;;  %v10207_v45 = vld [vmem:[%s10777_s4 + $0x10] sm:$0x3]  ;;  %v10478_v61 = vld [vmem:[%s10778_s5] sm:$0x3]  ;;  %vm6466_vm5 = vcmask 369664  }
   0xe   : > { %s8494_s29 = sshll.u32 %s10783_s28, 2  ;;  %s8749_s13 = sshll.u32 %s10783_s28, 3 }
   0xf   : > { %s312_s10 = scalar_lea.vmem %s10773_s0, %s8494_s29  ;;  %s9828_s16 = scalar_lea.vmem %s10774_s1, %s8749_s13 }
  0x10   : > { %v323_v2 = vld [vmem:[%s312_s10] sm:$0xf]  ;;  %v9862_v11 = vld [vmem:[%s9828_s16 + $0x4] sm:$0x3]  ;;  %v9882_v13 = vld [vmem:[%s9828_s16 + $0x6] sm:$0x3]  ;;  %s322_s9 = scalar_lea.vmem %s10781_s8, %s8749_s13 }
  0x11   : > { %8970 = vmatpush3.msk.msra.mxu0 %vm329_vm1, %v323_v2  ;;  %v403_v7 = vld [vmem:[%s9828_s16] sm:$0x3]  ;;  %v8501_v8 = vld [vmem:[%s9828_s16 + $0x2] sm:$0x3]  ;;  %s9749_s29 = smov 119  }
  0x12   : > { %8972 = vmatmul.mubr.msk.f32.vlgmr.msra.gmra.mrb[0].mxu0 %vm325_vm2, %v324_v1  ;;  %9064 = vmatprep.subr.mxu0 %v9745_v0 }
  0x13   : > { %9066 = vmatprep.mubr.msk.f32.mxu0 %vm9746_vm0, %v9745_v0 }
  0xe5   : > { %v399_v4 = vpop.f32.mrb[0].mxu0 }
  0xe6   : > { %779 = vrot.lane.b32.xlu0 %v399_v4, %s9747_s19  ;;  %v8973_v5 = vpop.f32.mrb[1].mxu0  ;;  %8975 = vmatpush3.msk.msra.mxu1 %vm473_vm3, %v399_v4  ;;  %v625_v6 = vrot.slane %v399_v4, 2  ;;  %v9853_v9 = vrot.slane %v399_v4, 4  ;;  %v9871_v12 = vrot.slane %v399_v4, 6 }
  0xe7   : > { %8977 = vmatmul.mubr.msk.f32.vlgmr.msra.gmra.mrb[0].mxu1 %vm469_vm4, %v9833_v3  ;;  %8979 = vmatprep.subr.mxu1 %v9745_v0  ;;  %v10508_v5 = vld [vmem:[%s10778_s5 + $0x4] sm:$0x3] }
  0xe8   : > { %2152 = vrot.lane.b32.xlu1 %v625_v6, %s9747_s19  ;;  %9065 = vmatpush3.msk.msra.mxu0 %vm473_vm3, %v625_v6 }
  0xe9   : > { %8980 = vmatpush3.msk.msra.mxu1 %vm473_vm3, %v403_v7  ;;  %8981 = vmatprep.mubr.msk.f32.mxu1 %vm9746_vm0, %v9745_v0 }
  0xea   : > { %857 = vrot.lane.b32.xlu0 %v403_v7, %s9747_s19  ;;  %8984 = vmatprep.subr.mxu1 %v9745_v0 }
  0xeb   : > { %9067 = vmatmul.mubr.msk.f32.vlgmr.msra.gmra.mrb[2].mxu0 %vm469_vm4, %v9833_v3  ;;  %9069 = vmatprep.subr.mxu0 %v9745_v0 }
  0xec   : > { %2227 = vrot.lane.b32.xlu1 %v8501_v8, %s9747_s19  ;;  %9070 = vmatpush3.msk.msra.mxu0 %vm473_vm3, %v8501_v8 }
  0xed   : > { %9071 = vmatprep.mubr.msk.f32.mxu0 %vm9746_vm0, %v9745_v0  ;;  %9074 = vmatprep.subr.mxu0 %v9745_v0 }
  0xee   : > { %1243 = vrot.lane.b32.xlu0 %v9853_v9, %s9747_s19 }
  0xef   : > { %8982 = vmatmul.mubr.msk.f32.vlgmr.msra.gmra.mrb[0].mxu1 %vm469_vm4, %v9858_v10 }
  0xf0   : > { %8985 = vmatpush3.msk.msra.mxu1 %vm473_vm3, %v625_v6  ;;  %1321 = vrot.lane.b32.xlu1 %v9862_v11, %s9747_s19 }
  0xf1   : > { %8986 = vmatprep.mubr.msk.f32.mxu1 %vm9746_vm0, %v9745_v0  ;;  %8989 = vmatprep.subr.mxu1 %v9745_v0 }
  0xf2   : > { %2586 = vrot.lane.b32.xlu0 %v9871_v12, %s9747_s19 }
  0xf3   : > { %9072 = vmatmul.mubr.msk.f32.vlgmr.msra.gmra.mrb[2].mxu0 %vm469_vm4, %v9858_v10 }
  0xf4   : > { %1399 = vrot.lane.b32.xlu1 %v399_v4, %s9748_s22  ;;  %9076 = vmatprep.mubr.msk.f32.mxu0 %vm9746_vm0, %v9745_v0 }
  0xf6   : > { %2661 = vrot.lane.b32.xlu0 %v9882_v13, %s9747_s19 }
  0xf7   : > { %8987 = vmatmul.mubr.msk.f32.vlgmr.msra.gmra.mrb[0].mxu1 %vm469_vm4, %v9890_v14 }
  0xf8   : > { %1477 = vrot.lane.b32.xlu1 %v403_v7, %s9748_s22  ;;  %8990 = vmatpush3.msk.msra.mxu1 %vm473_vm3, %v8501_v8 }
  0xf9   : > { %8991 = vmatprep.mubr.msk.f32.mxu1 %vm9746_vm0, %v9745_v0  ;;  %8994 = vmatprep.subr.mxu1 %v9745_v0 }
  0xfa   : > { %1555 = vrot.lane.b32.xlu0 %v625_v6, %s9748_s22 }
  0xfc   : > { %1633 = vrot.lane.b32.xlu1 %v8501_v8, %s9748_s22 }
  0xfe   : > { %1711 = vrot.lane.b32.xlu0 %v399_v4, %s9749_s29 }
  0xff   : > { %8992 = vmatmul.mubr.msk.f32.vlgmr.msra.gmra.mrb[0].mxu1 %vm469_vm4, %v9908_v15 }
 0x100   : > { %1789 = vrot.lane.b32.xlu1 %v403_v7, %s9749_s29  ;;  %8996 = vmatprep.mubr.msk.f32.mxu1 %vm9746_vm0, %v9745_v0 }
 0x102   : > { %3020 = vrot.lane.b32.xlu0 %v625_v6, %s9749_s29 }
 0x104   : > { %3095 = vrot.lane.b32.xlu1 %v8501_v8, %s9749_s29 }
 0x106   : > { %4023 = vrot.lane.b32.xlu0 %v9853_v9, %s9748_s22 }
 0x108   : > { %4098 = vrot.lane.b32.xlu1 %v9862_v11, %s9748_s22 }
 0x10a   : > { %4173 = vrot.lane.b32.xlu0 %v9871_v12, %s9748_s22 }
 0x10c   : > { %4248 = vrot.lane.b32.xlu1 %v9882_v13, %s9748_s22 }
 0x10e   : > { %4323 = vrot.lane.b32.xlu0 %v9853_v9, %s9749_s29 }
 0x110   : > { %4398 = vrot.lane.b32.xlu1 %v9862_v11, %s9749_s29 }
 0x112   : > { %5610 = vrot.lane.b32.xlu0 %v9871_v12, %s9749_s29 }
 0x114   : > { %5685 = vrot.lane.b32.xlu1 %v9882_v13, %s9749_s29 }
 0x116   : > { %465 = vperm.xlu0 %9736, %v410_v33  }
 0x158   : > { %v780_v17 = vpop.permute.xlu0 %779 }
 0x159   : > { %8995 = vmatpush3.msk.msra.mxu1 %vm473_vm3, %v780_v17  ;;  %9075 = vmatpush3.msk.msra.mxu0 %vm473_vm3, %v780_v17  ;;  %v411_v17 = vld [vmem:[%s10780_s7] sm:$0x3] }
 0x15a   : > { %8997 = vmatmul.mubr.msk.f32.vlgmr.msra.gmra.mrb[0].mxu1 %vm469_vm4, %v9937_v16  ;;  %9077 = vmatmul.mubr.msk.f32.vlgmr.msra.gmra.mrb[2].mxu0 %vm469_vm4, %v9890_v14  ;;  %v2153_v20 = vpop.permute.xlu1 %2152 }
 0x15b   : > { %8999 = vmatprep.subr.mxu1 %v9745_v0  ;;  %9079 = vmatprep.subr.mxu0 %v9745_v0 }
 0x15c   : > { %v858_v18 = vpop.permute.xlu0 %857  ;;  %9001 = vmatprep.mubr.msk.f32.mxu1 %vm9746_vm0, %v9745_v0  ;;  %9081 = vmatprep.mubr.msk.f32.mxu0 %vm9746_vm0, %v9745_v0 }
 0x15d   : > { %9000 = vmatpush3.msk.msra.mxu1 %vm473_vm3, %v858_v18  ;;  %9080 = vmatpush3.msk.msra.mxu0 %vm473_vm3, %v858_v18  ;;  %v10585_v18 = vld [vmem:[%s10778_s5 + $0xa] sm:$0x3] }
 0x15e   : > { %9004 = vmatprep.subr.mxu1 %v9745_v0  ;;  %9084 = vmatprep.subr.mxu0 %v9745_v0  ;;  %v2228_v22 = vpop.permute.xlu1 %2227 }
 0x160   : > { %v10034_v26 = vpop.permute.xlu0 %1243 }
 0x162   : > { %9002 = vmatmul.mubr.msk.f32.vlgmr.msra.gmra.mrb[0].mxu1 %vm469_vm4, %v9958_v19  ;;  %9082 = vmatmul.mubr.msk.f32.vlgmr.msra.gmra.mrb[2].mxu0 %vm469_vm4, %v9908_v15  ;;  %v10055_v28 = vpop.permute.xlu1 %1321 }
 0x163   : > { %9005 = vmatpush3.msk.msra.mxu1 %vm473_vm3, %v9853_v9  ;;  %9085 = vmatpush3.msk.msra.mxu0 %vm473_vm3, %v2153_v20 }
 0x164   : > { %9006 = vmatprep.mubr.msk.f32.mxu1 %vm9746_vm0, %v9745_v0  ;;  %9086 = vmatprep.mubr.msk.f32.mxu0 %vm9746_vm0, %v9745_v0  ;;  %v10076_v31 = vpop.permute.xlu0 %2586 }
 0x165   : > { %9009 = vmatprep.subr.mxu1 %v9745_v0  ;;  %9089 = vmatprep.subr.mxu0 %v9745_v0 }
 0x166   : > { %v10078_v32 = vpop.permute.xlu1 %1399 }
 0x168   : > { %v10104_v36 = vpop.permute.xlu0 %2661 }
 0x16a   : > { %9007 = vmatmul.mubr.msk.f32.vlgmr.msra.gmra.mrb[0].mxu1 %vm469_vm4, %v9976_v21  ;;  %9087 = vmatmul.mubr.msk.f32.vlgmr.msra.gmra.mrb[2].mxu0 %vm469_vm4, %v9937_v16  ;;  %v10102_v35 = vpop.permute.xlu1 %1477 }
 0x16b   : > { %9010 = vmatpush3.msk.msra.mxu1 %vm473_vm3, %v9862_v11  ;;  %9090 = vmatpush3.msk.msra.mxu0 %vm473_vm3, %v2228_v22 }
 0x16c   : > { %9011 = vmatprep.mubr.msk.f32.mxu1 %vm9746_vm0, %v9745_v0  ;;  %9014 = vmatprep.subr.mxu1 %v9745_v0  ;;  %v10125_v38 = vpop.permute.xlu0 %1555 }
 0x16d   : > { %9091 = vmatprep.mubr.msk.f32.mxu0 %vm9746_vm0, %v9745_v0  ;;  %9094 = vmatprep.subr.mxu0 %v9745_v0 }
 0x16e   : > { %v10146_v40 = vpop.permute.xlu1 %1633 }
 0x170   : > { %v10167_v42 = vpop.permute.xlu0 %1711 }
 0x172   : > { %9012 = vmatmul.mubr.msk.f32.vlgmr.msra.gmra.mrb[0].mxu1 %vm469_vm4, %v9994_v23  ;;  %9092 = vmatmul.mubr.msk.f32.vlgmr.msra.gmra.mrb[2].mxu0 %vm469_vm4, %v9958_v19  ;;  %v10188_v44 = vpop.permute.xlu1 %1789 }
 0x173   : > { %9015 = vmatpush3.msk.msra.mxu1 %vm473_vm3, %v9871_v12  ;;  %9095 = vmatpush3.msk.msra.mxu0 %vm473_vm3, %v9871_v12 }
 0x174   : > { %9016 = vmatprep.mubr.msk.f32.mxu1 %vm9746_vm0, %v9745_v0  ;;  %9096 = vmatprep.mubr.msk.f32.mxu0 %vm9746_vm0, %v9745_v0  ;;  %v10209_v46 = vpop.permute.xlu0 %3020 }
 0x175   : > { %9019 = vmatprep.subr.mxu1 %v9745_v0  ;;  %9099 = vmatprep.subr.mxu0 %v9745_v0 }
 0x176   : > { %v10232_v47 = vpop.permute.xlu1 %3095 }
 0x178   : > { %v4024_v48 = vpop.permute.xlu0 %4023 }
 0x17a   : > { %9017 = vmatmul.mubr.msk.f32.vlgmr.msra.gmra.mrb[0].mxu1 %vm469_vm4, %v10013_v24  ;;  %9097 = vmatmul.mubr.msk.f32.vlgmr.msra.gmra.mrb[2].mxu0 %vm469_vm4, %v9976_v21  ;;  %v4099_v49 = vpop.permute.xlu1 %4098 }
 0x17b   : > { %9020 = vmatpush3.msk.msra.mxu1 %vm473_vm3, %v9882_v13  ;;  %9100 = vmatpush3.msk.msra.mxu0 %vm473_vm3, %v9882_v13 }
 0x17c   : > { %9021 = vmatprep.mubr.msk.f32.mxu1 %vm9746_vm0, %v9745_v0  ;;  %9024 = vmatprep.subr.mxu1 %v9745_v0  ;;  %v4174_v50 = vpop.permute.xlu0 %4173 }
 0x17d   : > { %9101 = vmatprep.mubr.msk.f32.mxu0 %vm9746_vm0, %v9745_v0  ;;  %9104 = vmatprep.subr.mxu0 %v9745_v0 }
 0x17e   : > { %v4249_v51 = vpop.permute.xlu1 %4248 }
 0x180   : > { %v4324_v52 = vpop.permute.xlu0 %4323 }
 0x182   : > { %9022 = vmatmul.mubr.msk.f32.vlgmr.msra.gmra.mrb[0].mxu1 %vm469_vm4, %v10032_v25  ;;  %9102 = vmatmul.mubr.msk.f32.vlgmr.msra.gmra.mrb[2].mxu0 %vm469_vm4, %v9994_v23  ;;  %v4399_v53 = vpop.permute.xlu1 %4398 }
 0x183   : > { %9025 = vmatpush3.msk.msra.mxu1 %vm473_vm3, %v10034_v26  ;;  %9105 = vmatpush3.msk.msra.mxu0 %vm473_vm3, %v10034_v26 }
 0x184   : > { %9026 = vmatprep.mubr.msk.f32.mxu1 %vm9746_vm0, %v9745_v0  ;;  %9106 = vmatprep.mubr.msk.f32.mxu0 %vm9746_vm0, %v9745_v0  ;;  %v5611_v54 = vpop.permute.xlu0 %5610 }
 0x185   : > { %9029 = vmatprep.subr.mxu1 %v9745_v0  ;;  %9109 = vmatprep.subr.mxu0 %v9745_v0 }
 0x186   : > { %v5686_v55 = vpop.permute.xlu1 %5685 }
 0x18a   : > { %9027 = vmatmul.mubr.msk.f32.vlgmr.msra.gmra.mrb[0].mxu1 %vm469_vm4, %v10053_v27  ;;  %9107 = vmatmul.mubr.msk.f32.vlgmr.msra.gmra.mrb[2].mxu0 %vm469_vm4, %v10013_v24 }
 0x18b   : > { %9030 = vmatpush3.msk.msra.mxu1 %vm473_vm3, %v10055_v28  ;;  %9110 = vmatpush3.msk.msra.mxu0 %vm473_vm3, %v10055_v28 }
 0x18c   : > { %9031 = vmatprep.mubr.msk.f32.mxu1 %vm9746_vm0, %v9745_v0  ;;  %9034 = vmatprep.subr.mxu1 %v9745_v0 }
 0x18d   : > { %9111 = vmatprep.mubr.msk.f32.mxu0 %vm9746_vm0, %v9745_v0  ;;  %9114 = vmatprep.subr.mxu0 %v9745_v0 }
 0x192   : > { %9032 = vmatmul.mubr.msk.f32.vlgmr.msra.gmra.mrb[0].mxu1 %vm469_vm4, %v10074_v29  ;;  %9112 = vmatmul.mubr.msk.f32.vlgmr.msra.gmra.mrb[2].mxu0 %vm469_vm4, %v10032_v25 }
 0x193   : > { %9035 = vmatpush3.msk.msra.mxu1 %vm473_vm3, %v10078_v32  ;;  %9115 = vmatpush3.msk.msra.mxu0 %vm473_vm3, %v10076_v31 }
 0x194   : > { %9036 = vmatprep.mubr.msk.f32.mxu1 %vm9746_vm0, %v9745_v0  ;;  %9116 = vmatprep.mubr.msk.f32.mxu0 %vm9746_vm0, %v9745_v0 }
 0x195   : > { %9039 = vmatprep.subr.mxu1 %v9745_v0  ;;  %9119 = vmatprep.subr.mxu0 %v9745_v0  ;;  %v466_v56 = vpop.permute.xlu0 %465 }
 0x19a   : > { %9037 = vmatmul.mubr.msk.f32.vlgmr.msra.gmra.mrb[0].mxu1 %vm469_vm4, %v10100_v34  ;;  %9117 = vmatmul.mubr.msk.f32.vlgmr.msra.gmra.mrb[2].mxu0 %vm469_vm4, %v10053_v27 }
 0x19b   : > { %9040 = vmatpush3.msk.msra.mxu1 %vm473_vm3, %v10102_v35  ;;  %9120 = vmatpush3.msk.msra.mxu0 %vm473_vm3, %v10104_v36 }
 0x19c   : > { %9041 = vmatprep.mubr.msk.f32.mxu1 %vm9746_vm0, %v9745_v0  ;;  %9044 = vmatprep.subr.mxu1 %v9745_v0 }
 0x19d   : > { %9121 = vmatprep.mubr.msk.f32.mxu0 %vm9746_vm0, %v9745_v0  ;;  %9124 = vmatprep.subr.mxu0 %v9745_v0 }
 0x1a2   : > { %9042 = vmatmul.mubr.msk.f32.vlgmr.msra.gmra.mrb[0].mxu1 %vm469_vm4, %v10123_v37  ;;  %9122 = vmatmul.mubr.msk.f32.vlgmr.msra.gmra.mrb[2].mxu0 %vm469_vm4, %v10074_v29 }
 0x1a3   : > { %9045 = vmatpush3.msk.msra.mxu1 %vm473_vm3, %v10125_v38  ;;  %9125 = vmatpush3.msk.msra.mxu0 %vm473_vm3, %v10125_v38 }
 0x1a4   : > { %9046 = vmatprep.mubr.msk.f32.mxu1 %vm9746_vm0, %v9745_v0  ;;  %9126 = vmatprep.mubr.msk.f32.mxu0 %vm9746_vm0, %v9745_v0 }
 0x1a5   : > { %9049 = vmatprep.subr.mxu1 %v9745_v0  ;;  %9129 = vmatprep.subr.mxu0 %v9745_v0 }
 0x1aa   : > { %9047 = vmatmul.mubr.msk.f32.vlgmr.msra.gmra.mrb[0].mxu1 %vm469_vm4, %v10144_v39  ;;  %9127 = vmatmul.mubr.msk.f32.vlgmr.msra.gmra.mrb[2].mxu0 %vm469_vm4, %v10100_v34 }
 0x1ab   : > { %9050 = vmatpush3.msk.msra.mxu1 %vm473_vm3, %v10146_v40  ;;  %9130 = vmatpush3.msk.msra.mxu0 %vm473_vm3, %v10146_v40 }
 0x1ac   : > { %9051 = vmatprep.mubr.msk.f32.mxu1 %vm9746_vm0, %v9745_v0  ;;  %9054 = vmatprep.subr.mxu1 %v9745_v0 }
 0x1ad   : > { %9131 = vmatprep.mubr.msk.f32.mxu0 %vm9746_vm0, %v9745_v0  ;;  %9134 = vmatprep.subr.mxu0 %v9745_v0 }
 0x1b2   : > { %9052 = vmatmul.mubr.msk.f32.vlgmr.msra.gmra.mrb[0].mxu1 %vm469_vm4, %v10165_v41  ;;  %9132 = vmatmul.mubr.msk.f32.vlgmr.msra.gmra.mrb[2].mxu0 %vm469_vm4, %v10123_v37 }
 0x1b3   : > { %9055 = vmatpush3.msk.msra.mxu1 %vm473_vm3, %v10167_v42  ;;  %9135 = vmatpush3.msk.msra.mxu0 %vm473_vm3, %v10167_v42 }
 0x1b4   : > { %9056 = vmatprep.mubr.msk.f32.mxu1 %vm9746_vm0, %v9745_v0  ;;  %9136 = vmatprep.mubr.msk.f32.mxu0 %vm9746_vm0, %v9745_v0 }
 0x1b5   : > { %9059 = vmatprep.subr.mxu1 %v9745_v0  ;;  %9139 = vmatprep.subr.mxu0 %v9745_v0 }
 0x1ba   : > { %9057 = vmatmul.mubr.msk.f32.vlgmr.msra.gmra.mrb[0].mxu1 %vm469_vm4, %v10186_v43  ;;  %9137 = vmatmul.mubr.msk.f32.vlgmr.msra.gmra.mrb[2].mxu0 %vm469_vm4, %v10144_v39 }
 0x1bb   : > { %9060 = vmatpush3.msk.msra.mxu1 %vm473_vm3, %v10188_v44  ;;  %9140 = vmatpush3.msk.msra.mxu0 %vm473_vm3, %v10188_v44 }
 0x1bc   : > { %9061 = vmatprep.mubr.msk.f32.mxu1 %vm9746_vm0, %v9745_v0  ;;  %9141 = vmatprep.mubr.msk.f32.mxu0 %vm9746_vm0, %v9745_v0 }
 0x1bd   : > { %9144 = vmatprep.subr.mxu0 %v9745_v0  ;;  %9154 = vmatprep.subr.mxu1 %v9745_v0 }
 0x1c2   : > { %9062 = vmatmul.mubr.msk.f32.vlgmr.msra.gmra.mrb[0].mxu1 %vm469_vm4, %v10207_v45  ;;  %9142 = vmatmul.mubr.msk.f32.vlgmr.msra.gmra.mrb[2].mxu0 %vm469_vm4, %v10165_v41 }
 0x1c3   : > { %9145 = vmatpush3.msk.msra.mxu0 %vm473_vm3, %v10209_v46  ;;  %9155 = vmatpush3.msk.msra.mxu1 %vm473_vm3, %v9853_v9 }
 0x1c4   : > { %9156 = vmatprep.mubr.msk.f32.mxu1 %vm9746_vm0, %v9745_v0  ;;  %9146 = vmatprep.mubr.msk.f32.mxu0 %vm9746_vm0, %v9745_v0 }
 0x1c5   : > { %9159 = vmatprep.subr.mxu1 %v9745_v0  ;;  %9149 = vmatprep.subr.mxu0 %v9745_v0 }
 0x1c6   : > { %9157 = vmatmul.mubr.msk.f32.vlgmr.msra.gmra.mrb[2].mxu1 %vm469_vm4, %v9833_v3 }
 0x1c7   : > { %9160 = vmatpush3.msk.msra.mxu1 %vm473_vm3, %v9862_v11  ;;  %9161 = vmatprep.mubr.msk.f32.mxu1 %vm9746_vm0, %v9745_v0  ;;  %v10533_v11 = vld [vmem:[%s10778_s5 + $0x6] sm:$0x3] }
 0x1c8   : > { %9164 = vmatprep.subr.mxu1 %v9745_v0 }
 0x1ca   : > { %9147 = vmatmul.mubr.msk.f32.vlgmr.msra.gmra.mrb[2].mxu0 %vm469_vm4, %v10186_v43 }
 0x1cb   : > { %9150 = vmatpush3.msk.msra.mxu0 %vm473_vm3, %v10232_v47  ;;  %9151 = vmatprep.mubr.msk.f32.mxu0 %vm9746_vm0, %v9745_v0 }
 0x1cc   : > { %9244 = vmatprep.subr.mxu0 %v9745_v0 }
 0x1ce   : > { %9162 = vmatmul.mubr.msk.f32.vlgmr.msra.gmra.mrb[2].mxu1 %vm469_vm4, %v9858_v10 }
 0x1cf   : > { %9165 = vmatpush3.msk.msra.mxu1 %vm473_vm3, %v9871_v12  ;;  %9166 = vmatprep.mubr.msk.f32.mxu1 %vm9746_vm0, %v9745_v0 }
 0x1d0   : > { %9169 = vmatprep.subr.mxu1 %v9745_v0 }
 0x1d2   : > { %9152 = vmatmul.mubr.msk.f32.vlgmr.msra.gmra.mrb[2].mxu0 %vm469_vm4, %v10207_v45 }
 0x1d3   : > { %9245 = vmatpush3.msk.msra.mxu0 %vm473_vm3, %v9871_v12  ;;  %9246 = vmatprep.mubr.msk.f32.mxu0 %vm9746_vm0, %v9745_v0 }
 0x1d4   : > { %9249 = vmatprep.subr.mxu0 %v9745_v0 }
 0x1d6   : > { %9167 = vmatmul.mubr.msk.f32.vlgmr.msra.gmra.mrb[2].mxu1 %vm469_vm4, %v9890_v14  ;;  %9247 = vmatmul.mubr.msk.f32.vlgmr.msra.gmra.mrb[4].mxu0 %vm469_vm4, %v9833_v3  ;;  %v10490_v3 = vld [vmem:[%s10778_s5 + $0x2] sm:$0x3] }
 0x1d7   : > { %9170 = vmatpush3.msk.msra.mxu1 %vm473_vm3, %v9882_v13  ;;  %9250 = vmatpush3.msk.msra.mxu0 %vm473_vm3, %v9882_v13 }
 0x1d8   : > { %9171 = vmatprep.mubr.msk.f32.mxu1 %vm9746_vm0, %v9745_v0  ;;  %9174 = vmatprep.subr.mxu1 %v9745_v0 }
 0x1d9   : > { %9251 = vmatprep.mubr.msk.f32.mxu0 %vm9746_vm0, %v9745_v0  ;;  %9254 = vmatprep.subr.mxu0 %v9745_v0 }
 0x1de   : > { %9172 = vmatmul.mubr.msk.f32.vlgmr.msra.gmra.mrb[2].mxu1 %vm469_vm4, %v9908_v15  ;;  %9252 = vmatmul.mubr.msk.f32.vlgmr.msra.gmra.mrb[4].mxu0 %vm469_vm4, %v9858_v10 }
 0x1df   : > { %9175 = vmatpush3.msk.msra.mxu1 %vm473_vm3, %v10034_v26  ;;  %9255 = vmatpush3.msk.msra.mxu0 %vm473_vm3, %v10034_v26  ;;  %v10637_v26 = vld [vmem:[%s10778_s5 + $0x10] sm:$0x3] }
 0x1e0   : > { %9176 = vmatprep.mubr.msk.f32.mxu1 %vm9746_vm0, %v9745_v0  ;;  %9179 = vmatprep.subr.mxu1 %v9745_v0 }
 0x1e1   : > { %9256 = vmatprep.mubr.msk.f32.mxu0 %vm9746_vm0, %v9745_v0  ;;  %9259 = vmatprep.subr.mxu0 %v9745_v0 }
 0x1e6   : > { %9177 = vmatmul.mubr.msk.f32.vlgmr.msra.gmra.mrb[2].mxu1 %vm469_vm4, %v9937_v16  ;;  %9257 = vmatmul.mubr.msk.f32.vlgmr.msra.gmra.mrb[4].mxu0 %vm469_vm4, %v9890_v14 }
 0x1e7   : > { %9180 = vmatpush3.msk.msra.mxu1 %vm473_vm3, %v10055_v28  ;;  %9260 = vmatpush3.msk.msra.mxu0 %vm473_vm3, %v10055_v28 }
 0x1e8   : > { %9181 = vmatprep.mubr.msk.f32.mxu1 %vm9746_vm0, %v9745_v0  ;;  %9184 = vmatprep.subr.mxu1 %v9745_v0 }
 0x1e9   : > { %9261 = vmatprep.mubr.msk.f32.mxu0 %vm9746_vm0, %v9745_v0  ;;  %9264 = vmatprep.subr.mxu0 %v9745_v0 }
 0x1ee   : > { %9182 = vmatmul.mubr.msk.f32.vlgmr.msra.gmra.mrb[2].mxu1 %vm469_vm4, %v9958_v19  ;;  %9262 = vmatmul.mubr.msk.f32.vlgmr.msra.gmra.mrb[4].mxu0 %vm469_vm4, %v9908_v15 }
 0x1ef   : > { %9185 = vmatpush3.msk.msra.mxu1 %vm473_vm3, %v10078_v32  ;;  %9265 = vmatpush3.msk.msra.mxu0 %vm473_vm3, %v10076_v31 }
 0x1f0   : > { %9186 = vmatprep.mubr.msk.f32.mxu1 %vm9746_vm0, %v9745_v0  ;;  %9189 = vmatprep.subr.mxu1 %v9745_v0 }
 0x1f1   : > { %9266 = vmatprep.mubr.msk.f32.mxu0 %vm9746_vm0, %v9745_v0  ;;  %9269 = vmatprep.subr.mxu0 %v9745_v0 }
 0x1f6   : > { %9187 = vmatmul.mubr.msk.f32.vlgmr.msra.gmra.mrb[2].mxu1 %vm469_vm4, %v9976_v21  ;;  %9267 = vmatmul.mubr.msk.f32.vlgmr.msra.gmra.mrb[4].mxu0 %vm469_vm4, %v9937_v16  ;;  %v10553_v16 = vld [vmem:[%s10778_s5 + $0x8] sm:$0x3] }
 0x1f7   : > { %9190 = vmatpush3.msk.msra.mxu1 %vm473_vm3, %v10102_v35  ;;  %9270 = vmatpush3.msk.msra.mxu0 %vm473_vm3, %v10104_v36 }
 0x1f8   : > { %9191 = vmatprep.mubr.msk.f32.mxu1 %vm9746_vm0, %v9745_v0  ;;  %9194 = vmatprep.subr.mxu1 %v9745_v0 }
 0x1f9   : > { %9271 = vmatprep.mubr.msk.f32.mxu0 %vm9746_vm0, %v9745_v0  ;;  %9274 = vmatprep.subr.mxu0 %v9745_v0 }
 0x1fe   : > { %9192 = vmatmul.mubr.msk.f32.vlgmr.msra.gmra.mrb[2].mxu1 %vm469_vm4, %v9994_v23  ;;  %9272 = vmatmul.mubr.msk.f32.vlgmr.msra.gmra.mrb[4].mxu0 %vm469_vm4, %v9958_v19 }
 0x1ff   : > { %9195 = vmatpush3.msk.msra.mxu1 %vm473_vm3, %v10125_v38  ;;  %9275 = vmatpush3.msk.msra.mxu0 %vm473_vm3, %v10125_v38 }
 0x200   : > { %9196 = vmatprep.mubr.msk.f32.mxu1 %vm9746_vm0, %v9745_v0  ;;  %9199 = vmatprep.subr.mxu1 %v9745_v0 }
 0x201   : > { %9276 = vmatprep.mubr.msk.f32.mxu0 %vm9746_vm0, %v9745_v0  ;;  %9279 = vmatprep.subr.mxu0 %v9745_v0 }
 0x206   : > { %9197 = vmatmul.mubr.msk.f32.vlgmr.msra.gmra.mrb[2].mxu1 %vm469_vm4, %v10013_v24  ;;  %9277 = vmatmul.mubr.msk.f32.vlgmr.msra.gmra.mrb[4].mxu0 %vm469_vm4, %v9976_v21  ;;  %v10604_v21 = vld [vmem:[%s10778_s5 + $0xc] sm:$0x3] }
 0x207   : > { %9200 = vmatpush3.msk.msra.mxu1 %vm473_vm3, %v10146_v40  ;;  %9280 = vmatpush3.msk.msra.mxu0 %vm473_vm3, %v10146_v40 }
 0x208   : > { %9201 = vmatprep.mubr.msk.f32.mxu1 %vm9746_vm0, %v9745_v0  ;;  %9204 = vmatprep.subr.mxu1 %v9745_v0 }
 0x209   : > { %9281 = vmatprep.mubr.msk.f32.mxu0 %vm9746_vm0, %v9745_v0  ;;  %9284 = vmatprep.subr.mxu0 %v9745_v0 }
 0x20e   : > { %9202 = vmatmul.mubr.msk.f32.vlgmr.msra.gmra.mrb[2].mxu1 %vm469_vm4, %v10032_v25  ;;  %9282 = vmatmul.mubr.msk.f32.vlgmr.msra.gmra.mrb[4].mxu0 %vm469_vm4, %v9994_v23  ;;  %v10617_v23 = vld [vmem:[%s10778_s5 + $0xe] sm:$0x3] }
 0x20f   : > { %9205 = vmatpush3.msk.msra.mxu1 %vm473_vm3, %v10167_v42  ;;  %9285 = vmatpush3.msk.msra.mxu0 %vm473_vm3, %v10167_v42 }
 0x210   : > { %9206 = vmatprep.mubr.msk.f32.mxu1 %vm9746_vm0, %v9745_v0  ;;  %9209 = vmatprep.subr.mxu1 %v9745_v0 }
 0x211   : > { %9286 = vmatprep.mubr.msk.f32.mxu0 %vm9746_vm0, %v9745_v0  ;;  %9289 = vmatprep.subr.mxu0 %v9745_v0 }
 0x216   : > { %9207 = vmatmul.mubr.msk.f32.vlgmr.msra.gmra.mrb[2].mxu1 %vm469_vm4, %v10053_v27  ;;  %9287 = vmatmul.mubr.msk.f32.vlgmr.msra.gmra.mrb[4].mxu0 %vm469_vm4, %v10013_v24 }
 0x217   : > { %9210 = vmatpush3.msk.msra.mxu1 %vm473_vm3, %v10188_v44  ;;  %9290 = vmatpush3.msk.msra.mxu0 %vm473_vm3, %v10188_v44 }
 0x218   : > { %9211 = vmatprep.mubr.msk.f32.mxu1 %vm9746_vm0, %v9745_v0  ;;  %9214 = vmatprep.subr.mxu1 %v9745_v0 }
 0x219   : > { %9291 = vmatprep.mubr.msk.f32.mxu0 %vm9746_vm0, %v9745_v0  ;;  %9294 = vmatprep.subr.mxu0 %v9745_v0 }
 0x21e   : > { %9212 = vmatmul.mubr.msk.f32.vlgmr.msra.gmra.mrb[2].mxu1 %vm469_vm4, %v10074_v29  ;;  %9292 = vmatmul.mubr.msk.f32.vlgmr.msra.gmra.mrb[4].mxu0 %vm469_vm4, %v10032_v25 }
 0x21f   : > { %9215 = vmatpush3.msk.msra.mxu1 %vm473_vm3, %v4024_v48  ;;  %9295 = vmatpush3.msk.msra.mxu0 %vm473_vm3, %v10209_v46 }
 0x220   : > { %9216 = vmatprep.mubr.msk.f32.mxu1 %vm9746_vm0, %v9745_v0  ;;  %9296 = vmatprep.mubr.msk.f32.mxu0 %vm9746_vm0, %v9745_v0 }
 0x221   : > { %9299 = vmatprep.subr.mxu0 %v9745_v0  ;;  %9219 = vmatprep.subr.mxu1 %v9745_v0 }
 0x226   : > { %9217 = vmatmul.mubr.msk.f32.vlgmr.msra.gmra.mrb[2].mxu1 %vm469_vm4, %v10100_v34  ;;  %9297 = vmatmul.mubr.msk.f32.vlgmr.msra.gmra.mrb[4].mxu0 %vm469_vm4, %v10053_v27 }
 0x227   : > { %9300 = vmatpush3.msk.msra.mxu0 %vm473_vm3, %v10232_v47  ;;  %9220 = vmatpush3.msk.msra.mxu1 %vm473_vm3, %v4099_v49 }
 0x228   : > { %9221 = vmatprep.mubr.msk.f32.mxu1 %vm9746_vm0, %v9745_v0  ;;  %9224 = vmatprep.subr.mxu1 %v9745_v0 }
 0x229   : > { %9301 = vmatprep.mubr.msk.f32.mxu0 %vm9746_vm0, %v9745_v0  ;;  %9304 = vmatprep.subr.mxu0 %v9745_v0 }
 0x22e   : > { %9222 = vmatmul.mubr.msk.f32.vlgmr.msra.gmra.mrb[2].mxu1 %vm469_vm4, %v10123_v37  ;;  %9302 = vmatmul.mubr.msk.f32.vlgmr.msra.gmra.mrb[4].mxu0 %vm469_vm4, %v10074_v29 }
 0x22f   : > { %9225 = vmatpush3.msk.msra.mxu1 %vm473_vm3, %v4174_v50  ;;  %9305 = vmatpush3.msk.msra.mxu0 %vm473_vm3, %v4174_v50 }
 0x230   : > { %9226 = vmatprep.mubr.msk.f32.mxu1 %vm9746_vm0, %v9745_v0  ;;  %9306 = vmatprep.mubr.msk.f32.mxu0 %vm9746_vm0, %v9745_v0 }
 0x231   : > { %9229 = vmatprep.subr.mxu1 %v9745_v0  ;;  %9309 = vmatprep.subr.mxu0 %v9745_v0 }
 0x236   : > { %9227 = vmatmul.mubr.msk.f32.vlgmr.msra.gmra.mrb[2].mxu1 %vm469_vm4, %v10144_v39  ;;  %9307 = vmatmul.mubr.msk.f32.vlgmr.msra.gmra.mrb[4].mxu0 %vm469_vm4, %v10100_v34 }
 0x237   : > { %9230 = vmatpush3.msk.msra.mxu1 %vm473_vm3, %v4249_v51  ;;  %9310 = vmatpush3.msk.msra.mxu0 %vm473_vm3, %v4249_v51 }
 0x238   : > { %9231 = vmatprep.mubr.msk.f32.mxu1 %vm9746_vm0, %v9745_v0  ;;  %9234 = vmatprep.subr.mxu1 %v9745_v0 }
 0x239   : > { %9311 = vmatprep.mubr.msk.f32.mxu0 %vm9746_vm0, %v9745_v0  ;;  %9314 = vmatprep.subr.mxu0 %v9745_v0 }
 0x23e   : > { %9232 = vmatmul.mubr.msk.f32.vlgmr.msra.gmra.mrb[2].mxu1 %vm469_vm4, %v10165_v41  ;;  %9312 = vmatmul.mubr.msk.f32.vlgmr.msra.gmra.mrb[4].mxu0 %vm469_vm4, %v10123_v37 }
 0x23f   : > { %9235 = vmatpush3.msk.msra.mxu1 %vm473_vm3, %v4324_v52  ;;  %9315 = vmatpush3.msk.msra.mxu0 %vm473_vm3, %v4324_v52 }
 0x240   : > { %9236 = vmatprep.mubr.msk.f32.mxu1 %vm9746_vm0, %v9745_v0  ;;  %9316 = vmatprep.mubr.msk.f32.mxu0 %vm9746_vm0, %v9745_v0 }
 0x241   : > { %9319 = vmatprep.subr.mxu0 %v9745_v0  ;;  %9239 = vmatprep.subr.mxu1 %v9745_v0 }
 0x246   : > { %9237 = vmatmul.mubr.msk.f32.vlgmr.msra.gmra.mrb[2].mxu1 %vm469_vm4, %v10186_v43  ;;  %9317 = vmatmul.mubr.msk.f32.vlgmr.msra.gmra.mrb[4].mxu0 %vm469_vm4, %v10144_v39 }
 0x247   : > { %9320 = vmatpush3.msk.msra.mxu0 %vm473_vm3, %v4399_v53  ;;  %9240 = vmatpush3.msk.msra.mxu1 %vm473_vm3, %v4399_v53 }
 0x248   : > { %9241 = vmatprep.mubr.msk.f32.mxu1 %vm9746_vm0, %v9745_v0  ;;  %9321 = vmatprep.mubr.msk.f32.mxu0 %vm9746_vm0, %v9745_v0 }
 0x249   : > { %9324 = vmatprep.subr.mxu0 %v9745_v0  ;;  %9334 = vmatprep.subr.mxu1 %v9745_v0 }
 0x24e   : > { %9242 = vmatmul.mubr.msk.f32.vlgmr.msra.gmra.mrb[2].mxu1 %vm469_vm4, %v10207_v45  ;;  %9322 = vmatmul.mubr.msk.f32.vlgmr.msra.gmra.mrb[4].mxu0 %vm469_vm4, %v10165_v41 }
 0x24f   : > { %9325 = vmatpush3.msk.msra.mxu0 %vm473_vm3, %v5611_v54  ;;  %9326 = vmatprep.mubr.msk.f32.mxu0 %vm9746_vm0, %v9745_v0 }
 0x250   : > { %9329 = vmatprep.subr.mxu0 %v9745_v0  ;;  %9336 = vmatprep.mubr.msk.f32.mxu1 %vm9746_vm0, %v9745_v0 }
 0x256   : > { %9327 = vmatmul.mubr.msk.f32.vlgmr.msra.gmra.mrb[4].mxu0 %vm469_vm4, %v10186_v43 }
 0x257   : > { %9330 = vmatpush3.msk.msra.mxu0 %vm473_vm3, %v5686_v55  ;;  %9331 = vmatprep.mubr.msk.f32.mxu0 %vm9746_vm0, %v9745_v0 }
 0x258   : > { %9379 = vmatprep.subr.mxu0 %v9745_v0 }
 0x25e   : > { %9332 = vmatmul.mubr.msk.f32.vlgmr.msra.gmra.mrb[4].mxu0 %vm469_vm4, %v10207_v45 }
 0x25f   : > { %9381 = vmatprep.mubr.msk.f32.mxu0 %vm9746_vm0, %v9745_v0 }
 0x295   : > { %v1862_v57 = vpop.f32.mrb[0].mxu1 }
 0x296   : > { %v9514_v58 = vadd.f32 %v1862_v57, %v466_v56  ;;  %v9063_v59 = vpop.f32.mrb[1].mxu1 }
 0x298   : > { %v1867_v60 = vmax.f32 %v9514_v58, 0.0 }
 0x29a   : > { %5921 = vrot.lane.b32.xlu1 %v1867_v60, %s9747_s19  ;;  %9335 = vmatpush3.msk.msra.mxu1 %vm473_vm3, %v1867_v60 }
 0x29b   : > { %9339 = vmatprep.subr.mxu1 %v9745_v0  ;;  %9337 = vmatmul.mubr.msk.f32.vlgmr.msra.gmra.mrb[4].mxu1 %vm469_vm4, %v10478_v61 }
 0x29c   : > { %9341 = vmatprep.mubr.msk.f32.mxu1 %vm9746_vm0, %v9745_v0 }
 0x2a5   : > { %v3165_v62 = vpop.f32.mrb[2].mxu0 }
 0x2a6   : > { %v9515_v63 = vadd.f32 %v3165_v62, %v466_v56  ;;  %v9153_v1 = vpop.f32.mrb[3].mxu0 }
 0x2a8   : > { %v3170_v2 = vmax.f32 %v9515_v63, 0.0 }
 0x2aa   : > { %6610 = vrot.lane.b32.xlu1 %v3170_v2, %s9747_s19  ;;  %9340 = vmatpush3.msk.msra.mxu1 %vm473_vm3, %v3170_v2 }
 0x2ab   : > { %9380 = vmatpush3.msk.msra.mxu0 %vm473_vm3, %v3170_v2  ;;  %9344 = vmatprep.subr.mxu1 %v9745_v0 }
 0x2ac   : > { %9384 = vmatprep.subr.mxu0 %v9745_v0  ;;  %9342 = vmatmul.mubr.msk.f32.vlgmr.msra.gmra.mrb[4].mxu1 %vm469_vm4, %v10490_v3 }
 0x2ad   : > { %9382 = vmatmul.mubr.msk.f32.vlgmr.msra.gmra.mrb[6].mxu0 %vm469_vm4, %v10478_v61  ;;  %9346 = vmatprep.mubr.msk.f32.mxu1 %vm9746_vm0, %v9745_v0 }
 0x2ae   : > { %9386 = vmatprep.mubr.msk.f32.mxu0 %vm9746_vm0, %v9745_v0 }
 0x30c   : > { %v5922_v4 = vpop.permute.xlu1 %5921 }
 0x30d   : > { %9345 = vmatpush3.msk.msra.mxu1 %vm473_vm3, %v5922_v4  ;;  %9385 = vmatpush3.msk.msra.mxu0 %vm473_vm3, %v5922_v4 }
 0x30e   : > { %9389 = vmatprep.subr.mxu0 %v9745_v0  ;;  %9387 = vmatmul.mubr.msk.f32.vlgmr.msra.gmra.mrb[6].mxu0 %vm469_vm4, %v10490_v3 }
 0x30f   : > { %9349 = vmatprep.subr.mxu1 %v9745_v0  ;;  %9347 = vmatmul.mubr.msk.f32.vlgmr.msra.gmra.mrb[4].mxu1 %vm469_vm4, %v10508_v5 }
 0x310   : > { %9351 = vmatprep.mubr.msk.f32.mxu1 %vm9746_vm0, %v9745_v0  ;;  %9391 = vmatprep.mubr.msk.f32.mxu0 %vm9746_vm0, %v9745_v0 }
 0x31c   : > { %v6611_v6 = vpop.permute.xlu1 %6610 }
 0x31d   : > { %9390 = vmatpush3.msk.msra.mxu0 %vm473_vm3, %v6611_v6 }
 0x31e   : > { %9394 = vmatprep.subr.mxu0 %v9745_v0  ;;  %9392 = vmatmul.mubr.msk.f32.vlgmr.msra.gmra.mrb[6].mxu0 %vm469_vm4, %v10508_v5 }
 0x31f   : > { %9396 = vmatprep.mubr.msk.f32.mxu0 %vm9746_vm0, %v9745_v0 }
 0x321   : > { %v4468_v7 = vpop.f32.mrb[2].mxu1 }
 0x322   : > { %v9516_v8 = vadd.f32 %v4468_v7, %v466_v56  ;;  %v9243_v9 = vpop.f32.mrb[3].mxu1 }
 0x324   : > { %v10528_v10 = vmax.f32 %v9516_v8, 0.0 }
 0x326   : > { %6153 = vrot.lane.b32.xlu0 %v10528_v10, %s9747_s19  ;;  %9350 = vmatpush3.msk.msra.mxu1 %vm473_vm3, %v10528_v10 }
 0x327   : > { %9354 = vmatprep.subr.mxu1 %v9745_v0  ;;  %9352 = vmatmul.mubr.msk.f32.vlgmr.msra.gmra.mrb[4].mxu1 %vm469_vm4, %v10533_v11 }
 0x328   : > { %9356 = vmatprep.mubr.msk.f32.mxu1 %vm9746_vm0, %v9745_v0 }
 0x32a   : > { %6231 = vrot.lane.b32.xlu0 %v1867_v60, %s9748_s22 }
 0x32e   : > { %6387 = vrot.lane.b32.xlu0 %v1867_v60, %s9749_s29 }
 0x331   : > { %v5755_v12 = vpop.f32.mrb[4].mxu0 }
 0x332   : > { %v9517_v13 = vadd.f32 %v5755_v12, %v466_v56  ;;  %7548 = vrot.lane.b32.xlu0 %v10528_v10, %s9748_s22  ;;  %v9333_v14 = vpop.f32.mrb[5].mxu0 }
 0x334   : > { %v10548_v15 = vmax.f32 %v9517_v13, 0.0 }
 0x336   : > { %7698 = vrot.lane.b32.xlu0 %v10528_v10, %s9749_s29  ;;  %6827 = vrot.lane.b32.xlu1 %v10548_v15, %s9747_s19 }
 0x337   : > { %9355 = vmatpush3.msk.msra.mxu1 %vm473_vm3, %v10548_v15  ;;  %9395 = vmatpush3.msk.msra.mxu0 %vm473_vm3, %v10548_v15 }
 0x338   : > { %9357 = vmatmul.mubr.msk.f32.vlgmr.msra.gmra.mrb[4].mxu1 %vm469_vm4, %v10553_v16  ;;  %9359 = vmatprep.subr.mxu1 %v9745_v0 }
 0x339   : > { %9399 = vmatprep.subr.mxu0 %v9745_v0  ;;  %9397 = vmatmul.mubr.msk.f32.vlgmr.msra.gmra.mrb[6].mxu0 %vm469_vm4, %v10533_v11 }
 0x33a   : > { %5763 = vperm.xlu0 %9736, %v411_v17   ;;  %6309 = vrot.lane.b32.xlu1 %v3170_v2, %s9748_s22 }
 0x33b   : > { %9361 = vmatprep.mubr.msk.f32.mxu1 %vm9746_vm0, %v9745_v0  ;;  %9401 = vmatprep.mubr.msk.f32.mxu0 %vm9746_vm0, %v9745_v0 }
 0x33e   : > { %7044 = vrot.lane.b32.xlu1 %v3170_v2, %s9749_s29 }
 0x342   : > { %7623 = vrot.lane.b32.xlu1 %v10548_v15, %s9748_s22 }
 0x346   : > { %8344 = vrot.lane.b32.xlu1 %v10548_v15, %s9749_s29 }
 0x398   : > { %v6154_v19 = vpop.permute.xlu0 %6153 }
 0x399   : > { %9360 = vmatpush3.msk.msra.mxu1 %vm473_vm3, %v6154_v19  ;;  %9400 = vmatpush3.msk.msra.mxu0 %vm473_vm3, %v6154_v19 }
 0x39a   : > { %9364 = vmatprep.subr.mxu1 %v9745_v0  ;;  %9362 = vmatmul.mubr.msk.f32.vlgmr.msra.gmra.mrb[4].mxu1 %vm469_vm4, %v10585_v18 }
 0x39b   : > { %9402 = vmatmul.mubr.msk.f32.vlgmr.msra.gmra.mrb[6].mxu0 %vm469_vm4, %v10553_v16  ;;  %9366 = vmatprep.mubr.msk.f32.mxu1 %vm9746_vm0, %v9745_v0 }
 0x39c   : > { %v6232_v20 = vpop.permute.xlu0 %6231  ;;  %9404 = vmatprep.subr.mxu0 %v9745_v0  ;;  %9406 = vmatprep.mubr.msk.f32.mxu0 %vm9746_vm0, %v9745_v0 }
 0x39d   : > { %9365 = vmatpush3.msk.msra.mxu1 %vm473_vm3, %v6232_v20 }
 0x39e   : > { %9369 = vmatprep.subr.mxu1 %v9745_v0 }
 0x3a0   : > { %v6388_v25 = vpop.permute.xlu0 %6387 }
 0x3a2   : > { %9367 = vmatmul.mubr.msk.f32.vlgmr.msra.gmra.mrb[4].mxu1 %vm469_vm4, %v10604_v21 }
 0x3a3   : > { %9371 = vmatprep.mubr.msk.f32.mxu1 %vm9746_vm0, %v9745_v0 }
 0x3a4   : > { %v7549_v28 = vpop.permute.xlu0 %7548 }
 0x3a8   : > { %v6828_v22 = vpop.permute.xlu1 %6827  ;;  %v7699_v30 = vpop.permute.xlu0 %7698 }
 0x3a9   : > { %9405 = vmatpush3.msk.msra.mxu0 %vm473_vm3, %v6828_v22 }
 0x3aa   : > { %9407 = vmatmul.mubr.msk.f32.vlgmr.msra.gmra.mrb[6].mxu0 %vm469_vm4, %v10585_v18  ;;  %9409 = vmatprep.subr.mxu0 %v9745_v0 }
 0x3ab   : > { %9411 = vmatprep.mubr.msk.f32.mxu0 %vm9746_vm0, %v9745_v0 }
 0x3ac   : > { %v6310_v24 = vpop.permute.xlu1 %6309 }
 0x3ad   : > { %9370 = vmatpush3.msk.msra.mxu1 %vm473_vm3, %v6310_v24  ;;  %9410 = vmatpush3.msk.msra.mxu0 %vm473_vm3, %v6310_v24 }
 0x3ae   : > { %9372 = vmatmul.mubr.msk.f32.vlgmr.msra.gmra.mrb[4].mxu1 %vm469_vm4, %v10617_v23  ;;  %9374 = vmatprep.subr.mxu1 %v9745_v0 }
 0x3af   : > { %9375 = vmatpush3.msk.msra.mxu1 %vm473_vm3, %v6388_v25  ;;  %9414 = vmatprep.subr.mxu0 %v9745_v0 }
 0x3b0   : > { %9376 = vmatprep.mubr.msk.f32.mxu1 %vm9746_vm0, %v9745_v0  ;;  %9424 = vmatprep.subr.mxu1 %v9745_v0  ;;  %v7045_v27 = vpop.permute.xlu1 %7044 }
 0x3b2   : > { %9412 = vmatmul.mubr.msk.f32.vlgmr.msra.gmra.mrb[6].mxu0 %vm469_vm4, %v10604_v21 }
 0x3b3   : > { %9415 = vmatpush3.msk.msra.mxu0 %vm473_vm3, %v6388_v25  ;;  %9416 = vmatprep.mubr.msk.f32.mxu0 %vm9746_vm0, %v9745_v0 }
 0x3b4   : > { %9419 = vmatprep.subr.mxu0 %v9745_v0  ;;  %v7624_v29 = vpop.permute.xlu1 %7623 }
 0x3b6   : > { %9377 = vmatmul.mubr.msk.f32.vlgmr.msra.gmra.mrb[4].mxu1 %vm469_vm4, %v10637_v26 }
 0x3b7   : > { %9425 = vmatpush3.msk.msra.mxu1 %vm473_vm3, %v10528_v10  ;;  %9426 = vmatprep.mubr.msk.f32.mxu1 %vm9746_vm0, %v9745_v0 }
 0x3b8   : > { %9429 = vmatprep.subr.mxu1 %v9745_v0  ;;  %v8345_v31 = vpop.permute.xlu1 %8344 }
 0x3b9   : > { %v5764_v32 = vpop.permute.xlu0 %5763 }
 0x3ba   : > { %9417 = vmatmul.mubr.msk.f32.vlgmr.msra.gmra.mrb[6].mxu0 %vm469_vm4, %v10617_v23  ;;  %9427 = vmatmul.mubr.msk.f32.vlgmr.msra.gmra.mrb[6].mxu1 %vm469_vm4, %v10478_v61 }
 0x3bb   : > { %9420 = vmatpush3.msk.msra.mxu0 %vm473_vm3, %v7045_v27  ;;  %9430 = vmatpush3.msk.msra.mxu1 %vm473_vm3, %v10548_v15 }
 0x3bc   : > { %9421 = vmatprep.mubr.msk.f32.mxu0 %vm9746_vm0, %v9745_v0  ;;  %9431 = vmatprep.mubr.msk.f32.mxu1 %vm9746_vm0, %v9745_v0 }
 0x3bd   : > { %9434 = vmatprep.subr.mxu1 %v9745_v0  ;;  %9469 = vmatprep.subr.mxu0 %v9745_v0 }
 0x3c2   : > { %9422 = vmatmul.mubr.msk.f32.vlgmr.msra.gmra.mrb[6].mxu0 %vm469_vm4, %v10637_v26  ;;  %9432 = vmatmul.mubr.msk.f32.vlgmr.msra.gmra.mrb[6].mxu1 %vm469_vm4, %v10490_v3 }
 0x3c3   : > { %9435 = vmatpush3.msk.msra.mxu1 %vm473_vm3, %v6154_v19  ;;  %9470 = vmatpush3.msk.msra.mxu0 %vm473_vm3, %v10548_v15 }
 0x3c4   : > { %9471 = vmatprep.mubr.msk.f32.mxu0 %vm9746_vm0, %v9745_v0  ;;  %9474 = vmatprep.subr.mxu0 %v9745_v0 }
 0x3c5   : > { %9436 = vmatprep.mubr.msk.f32.mxu1 %vm9746_vm0, %v9745_v0  ;;  %9439 = vmatprep.subr.mxu1 %v9745_v0 }
 0x3c6   : > { %9472 = vmatmul.mubr.msk.f32.vlgmr.msra.gmra.mrb[8].mxu0 %vm469_vm4, %v10478_v61 }
 0x3c7   : > { %9475 = vmatpush3.msk.msra.mxu0 %vm473_vm3, %v6154_v19  ;;  %9476 = vmatprep.mubr.msk.f32.mxu0 %vm9746_vm0, %v9745_v0 }
 0x3c8   : > { %9479 = vmatprep.subr.mxu0 %v9745_v0 }
 0x3ca   : > { %9437 = vmatmul.mubr.msk.f32.vlgmr.msra.gmra.mrb[6].mxu1 %vm469_vm4, %v10508_v5 }
 0x3cb   : > { %9440 = vmatpush3.msk.msra.mxu1 %vm473_vm3, %v6232_v20  ;;  %9441 = vmatprep.mubr.msk.f32.mxu1 %vm9746_vm0, %v9745_v0 }
 0x3cc   : > { %9444 = vmatprep.subr.mxu1 %v9745_v0 }
 0x3ce   : > { %9477 = vmatmul.mubr.msk.f32.vlgmr.msra.gmra.mrb[8].mxu0 %vm469_vm4, %v10490_v3 }
 0x3cf   : > { %9480 = vmatpush3.msk.msra.mxu0 %vm473_vm3, %v6828_v22  ;;  %9481 = vmatprep.mubr.msk.f32.mxu0 %vm9746_vm0, %v9745_v0 }
 0x3d0   : > { %9484 = vmatprep.subr.mxu0 %v9745_v0 }
 0x3d2   : > { %9442 = vmatmul.mubr.msk.f32.vlgmr.msra.gmra.mrb[6].mxu1 %vm469_vm4, %v10533_v11 }
 0x3d3   : > { %9445 = vmatpush3.msk.msra.mxu1 %vm473_vm3, %v6310_v24  ;;  %9446 = vmatprep.mubr.msk.f32.mxu1 %vm9746_vm0, %v9745_v0 }
 0x3d4   : > { %9449 = vmatprep.subr.mxu1 %v9745_v0 }
 0x3d6   : > { %9482 = vmatmul.mubr.msk.f32.vlgmr.msra.gmra.mrb[8].mxu0 %vm469_vm4, %v10508_v5 }
 0x3d7   : > { %9485 = vmatpush3.msk.msra.mxu0 %vm473_vm3, %v6310_v24  ;;  %9486 = vmatprep.mubr.msk.f32.mxu0 %vm9746_vm0, %v9745_v0 }
 0x3d8   : > { %9489 = vmatprep.subr.mxu0 %v9745_v0 }
 0x3da   : > { %9447 = vmatmul.mubr.msk.f32.vlgmr.msra.gmra.mrb[6].mxu1 %vm469_vm4, %v10553_v16 }
 0x3db   : > { %9450 = vmatpush3.msk.msra.mxu1 %vm473_vm3, %v6388_v25  ;;  %9451 = vmatprep.mubr.msk.f32.mxu1 %vm9746_vm0, %v9745_v0 }
 0x3dc   : > { %9454 = vmatprep.subr.mxu1 %v9745_v0 }
 0x3de   : > { %9487 = vmatmul.mubr.msk.f32.vlgmr.msra.gmra.mrb[8].mxu0 %vm469_vm4, %v10533_v11 }
 0x3df   : > { %9490 = vmatpush3.msk.msra.mxu0 %vm473_vm3, %v6388_v25  ;;  %9491 = vmatprep.mubr.msk.f32.mxu0 %vm9746_vm0, %v9745_v0 }
 0x3e0   : > { %9494 = vmatprep.subr.mxu0 %v9745_v0 }
 0x3e2   : > { %9452 = vmatmul.mubr.msk.f32.vlgmr.msra.gmra.mrb[6].mxu1 %vm469_vm4, %v10585_v18 }
 0x3e3   : > { %9455 = vmatpush3.msk.msra.mxu1 %vm473_vm3, %v7549_v28  ;;  %9456 = vmatprep.mubr.msk.f32.mxu1 %vm9746_vm0, %v9745_v0 }
 0x3e4   : > { %9459 = vmatprep.subr.mxu1 %v9745_v0 }
 0x3e6   : > { %9492 = vmatmul.mubr.msk.f32.vlgmr.msra.gmra.mrb[8].mxu0 %vm469_vm4, %v10553_v16 }
 0x3e7   : > { %9495 = vmatpush3.msk.msra.mxu0 %vm473_vm3, %v7045_v27  ;;  %9496 = vmatprep.mubr.msk.f32.mxu0 %vm9746_vm0, %v9745_v0 }
 0x3e8   : > { %9499 = vmatprep.subr.mxu0 %v9745_v0 }
 0x3ea   : > { %9457 = vmatmul.mubr.msk.f32.vlgmr.msra.gmra.mrb[6].mxu1 %vm469_vm4, %v10604_v21 }
 0x3eb   : > { %9460 = vmatpush3.msk.msra.mxu1 %vm473_vm3, %v7624_v29  ;;  %9461 = vmatprep.mubr.msk.f32.mxu1 %vm9746_vm0, %v9745_v0 }
 0x3ec   : > { %9464 = vmatprep.subr.mxu1 %v9745_v0 }
 0x3ee   : > { %9497 = vmatmul.mubr.msk.f32.vlgmr.msra.gmra.mrb[8].mxu0 %vm469_vm4, %v10585_v18 }
 0x3ef   : > { %9500 = vmatpush3.msk.msra.mxu0 %vm473_vm3, %v7624_v29  ;;  %9501 = vmatprep.mubr.msk.f32.mxu0 %vm9746_vm0, %v9745_v0 }
 0x3f0   : > { %9504 = vmatprep.subr.mxu0 %v9745_v0 }
 0x3f2   : > { %9462 = vmatmul.mubr.msk.f32.vlgmr.msra.gmra.mrb[6].mxu1 %vm469_vm4, %v10617_v23 }
 0x3f3   : > { %9465 = vmatpush3.msk.msra.mxu1 %vm473_vm3, %v7699_v30  ;;  %9466 = vmatprep.mubr.msk.f32.mxu1 %vm9746_vm0, %v9745_v0 }
 0x3f6   : > { %9502 = vmatmul.mubr.msk.f32.vlgmr.msra.gmra.mrb[8].mxu0 %vm469_vm4, %v10604_v21 }
 0x3f7   : > { %9505 = vmatpush3.msk.msra.mxu0 %vm473_vm3, %v7699_v30  ;;  %9506 = vmatprep.mubr.msk.f32.mxu0 %vm9746_vm0, %v9745_v0 }
 0x3f8   : > { %9509 = vmatprep.subr.mxu0 %v9745_v0 }
 0x3fa   : > { %9467 = vmatmul.mubr.msk.f32.vlgmr.msra.gmra.mrb[6].mxu1 %vm469_vm4, %v10637_v26 }
 0x3fe   : > { %9507 = vmatmul.mubr.msk.f32.vlgmr.msra.gmra.mrb[8].mxu0 %vm469_vm4, %v10617_v23 }
 0x3ff   : > { %9510 = vmatpush3.msk.msra.mxu0 %vm473_vm3, %v8345_v31  ;;  %9511 = vmatprep.mubr.msk.f32.mxu0 %vm9746_vm0, %v9745_v0 }
 0x406   : > { %9512 = vmatmul.mubr.msk.f32.vlgmr.msra.gmra.mrb[8].mxu0 %vm469_vm4, %v10637_v26 }
 0x489   : > { %v6460_v33 = vpop.f32.mrb[4].mxu1 }
 0x48a   : > { %v9518_v34 = vadd.f32 %v6460_v33, %v5764_v32  ;;  %v9378_v35 = vpop.f32.mrb[5].mxu1 }
 0x48c   : > { %v6465_v36 = vmax.f32 %v9518_v34, 0.0 }
 0x48e   : > { %6467 = vst.msk [vmem:[%s322_s9] sm:$0x3] %vm6466_vm5, %v6465_v36 }
 0x495   : > { %v7114_v37 = vpop.f32.mrb[6].mxu0 }
 0x496   : > { %v9519_v38 = vadd.f32 %v7114_v37, %v5764_v32  ;;  %v9423_v39 = vpop.f32.mrb[7].mxu0 }
 0x498   : > { %v7119_v0 = vmax.f32 %v9519_v38, 0.0 }
 0x49a   : > { %8708 = vst.msk [vmem:[%s322_s9 + $0x2] sm:$0x3] %vm6466_vm5, %v7119_v0 }
 0x4cd   : > { %v7768_v40 = vpop.f32.mrb[6].mxu1 }
 0x4ce   : > { %v9520_v41 = vadd.f32 %v7768_v40, %v5764_v32  ;;  %v9468_v42 = vpop.f32.mrb[7].mxu1 }
 0x4d0   : > { %v7773_v43 = vmax.f32 %v9520_v41, 0.0 }
 0x4d2   : > { %8727 = vst.msk [vmem:[%s322_s9 + $0x4] sm:$0x3] %vm6466_vm5, %v7773_v43 }
 0x4d9   : > { %v8414_v44 = vpop.f32.mrb[8].mxu0 }
 0x4da   : > { %v9521_v45 = vadd.f32 %v8414_v44, %v5764_v32  ;;  %v9513_v46 = vpop.f32.mrb[9].mxu0 }
 0x4dc   : > { %v8419_v47 = vmax.f32 %v9521_v45, 0.0 }
 0x4de   : > { %8746 = vst.msk [vmem:[%s322_s9 + $0x6] sm:$0x3] %vm6466_vm5, %v8419_v47 }
 0x4df PF: > { %s18_s27 = sadd.s32 1, %s9743_s27  }
 0x4e0   : > { %p15_p4 = scmp.ge.s32.totalorder %s18_s27, 4  }
 0x4e2   :  { %17 = sbr.rel (!%p15_p4) target bundleno = 1 (0x1), region = 115 }

</bundles_post_ra>
